<compile_context>
chip_gen: v7x
topology: tpu7x:2x2x1
jax: 0.10.0
libtpu: 0.0.40
codegen_flags: <defaults>
</compile_context>

<pallas_src>
import functools
import math

import jax
import jax.numpy as jnp
from jax.experimental import pallas as pl
from jax.experimental.pallas import tpu as pltpu


# ----------------------------------------------------------------------------
# Tiling helpers (static, shape-only)
# ----------------------------------------------------------------------------
def _round_up(a, b):
    return (a + b - 1) // b * b


def _tile_m(M):
    # spatial-row tile: multiple of 8 sublanes, capped at 256
    return 256 if M >= 256 else _round_up(max(M, 8), 8)


def _tile_k(K):
    # contraction tile: multiple of 128 lanes, capped at 512
    return min(_round_up(max(K, 128), 128), 512)


def _k_pad(K):
    return _round_up(K, _tile_k(K))


# ----------------------------------------------------------------------------
# Pallas fused conv2d (+ bias + time-mask + LeakyReLU) kernel
# ----------------------------------------------------------------------------
def _conv_kernel(x_ref, w_ref, b_ref, m_ref, o_ref, acc_ref, *, apply_act):
    # x: (TM, TK) bf16, w: (TK, Cout) bf16, b: (1, Cout) f32, m: (TM, 1) f32
    # o: (TM, Cout) f32, acc: (TM, Cout) f32 VMEM scratch (resident across K)
    k = pl.program_id(3)

    @pl.when(k == 0)
    def _():
        acc_ref[...] = jnp.zeros_like(acc_ref)

    acc_ref[...] += jnp.dot(x_ref[...], w_ref[...],
                            preferred_element_type=jnp.float32)

    @pl.when(k == pl.num_programs(3) - 1)
    def _():
        out = (acc_ref[...] + b_ref[...]) * m_ref[...]   # bias + time mask
        if apply_act:
            out = jnp.where(out >= 0.0, out, 0.1 * out)  # LeakyReLU(0.1)
        o_ref[...] = out.astype(o_ref.dtype)


def conv2d_grouped_pallas(x_g, wk, b2, mask_t, *, KH, KW, Cin, Cout,
                          stride_w, dilation_h, apply_act):
    """Grouped Conv2d with stride=(1, stride_w), dilation=(dilation_h, 1) and
    PyTorch get_2d_padding(), followed by `* z_mask` and optional
    LeakyReLU(0.1), fused in a single Pallas TPU kernel.

    x_g    : (B, G, H, W, Cin)      activations (G weight groups, e.g. octaves)
    wk     : (G, Kpad, Cout) bf16   dense im2col weights (built at param time)
    b2     : (G, 1, Cout)   f32     bias
    mask_t : (B, H)         f32     time-frame validity mask (1 = valid)
    returns: (B, G, Hout, Wout, Cout) f32
    """
    B, G, H, W, _ = x_g.shape
    pad_h = (KH - 1) * dilation_h // 2
    pad_w = (KW - 1) // 2
    Hout = H                                          # time size is preserved
    Wout = (W + 2 * pad_w - KW) // stride_w + 1
    K = KH * KW * Cin
    M = Hout * Wout

    # ---- plain-JAX glue: pad + im2col over (KH, KW) taps, bf16 operands ----
    xp = jnp.pad(x_g.astype(jnp.bfloat16),
                 ((0, 0), (0, 0), (pad_h, pad_h), (pad_w, pad_w), (0, 0)))
    cols = []
    for kh in range(KH):
        h0 = kh * dilation_h
        for kw in range(KW):
            cols.append(jax.lax.slice(
                xp,
                (0, 0, h0, kw, 0),
                (B, G, h0 + Hout, kw + (Wout - 1) * stride_w + 1, Cin),
                (1, 1, 1, stride_w, 1)))
    xc = jnp.stack(cols, axis=4).reshape(B, G, M, K)  # feature order (kh,kw,ci)

    TM = _tile_m(M)
    TK = _tile_k(K)
    Mpad = _round_up(M, TM)
    Kpad = _round_up(K, TK)
    assert wk.shape == (G, Kpad, Cout), (wk.shape, (G, Kpad, Cout))
    assert b2.shape == (G, 1, Cout)

    xc = jnp.pad(xc, ((0, 0), (0, 0), (0, Mpad - M), (0, Kpad - K)))
    mrows = jnp.repeat(mask_t.astype(jnp.float32), Wout, axis=1)  # (B, M)
    mrows = jnp.pad(mrows, ((0, 0), (0, Mpad - M)))[:, :, None]   # (B, Mpad, 1)

    # Explicit, bounded VMEM budget (fits v5e 16MiB / v6e 32MiB / v7x 32MiB
    # default scoped limits; tiles are capped so this never explodes).
    est = (2 * TM * TK * 2 + 2 * TK * Cout * 2 + 2 * TM * Cout * 4
           + 2 * TM * 4 + 2 * Cout * 4 + TM * Cout * 4 + (1 << 20))
    vmem_limit = int(min(max(8 * est, 16 << 20), 32 << 20))

    grid = (B, G, Mpad // TM, Kpad // TK)             # K (reduction) innermost
    out = pl.pallas_call(
        functools.partial(_conv_kernel, apply_act=apply_act),
        out_shape=jax.ShapeDtypeStruct((B, G, Mpad, Cout), jnp.float32),
        grid=grid,
        in_specs=[
            pl.BlockSpec((None, None, TM, TK), lambda b, g, m, k: (b, g, m, k)),
            pl.BlockSpec((None, TK, Cout), lambda b, g, m, k: (g, k, 0)),
            pl.BlockSpec((None, 1, Cout), lambda b, g, m, k: (g, 0, 0)),
            pl.BlockSpec((None, TM, 1), lambda b, g, m, k: (b, m, 0)),
        ],
        out_specs=pl.BlockSpec((None, None, TM, Cout),
                               lambda b, g, m, k: (b, g, m, 0)),
        scratch_shapes=[pltpu.VMEM((TM, Cout), jnp.float32)],
        compiler_params=pltpu.CompilerParams(
            dimension_semantics=("parallel", "parallel", "parallel", "arbitrary"),
            vmem_limit_bytes=vmem_limit),
    )(xc, wk, b2, mrows)
    return out[:, :, :M, :].reshape(B, G, Hout, Wout, Cout)


# ----------------------------------------------------------------------------
# Front-end stand-ins (external-library pieces of the reference module)
# ----------------------------------------------------------------------------
def resample_2x(x):
    # TODO(synk): torchaudio.transforms.Resample uses windowed-sinc interpolation;
    # deterministic 2x linear-interpolation upsample used as a stand-in.
    x_next = jnp.concatenate([x[:, 1:], x[:, -1:]], axis=-1)
    mid = 0.5 * (x + x_next)
    return jnp.stack([x, mid], axis=-1).reshape(x.shape[0], -1)


def cqt_standin(x2, fs2, hop, n_bins, bins_per_octave):
    # TODO(synk): nnAudio CQT replaced by a deterministic framed complex-basis
    # transform (same output layout: complex (B, n_bins, T_frames)).
    B, L2 = x2.shape
    win = 2 * hop
    T = L2 // hop
    xpad = jnp.pad(x2, ((0, 0), (0, win)))
    idx = jnp.arange(T)[:, None] * hop + jnp.arange(win)[None, :]
    frames = xpad[:, idx]                                # (B, T, win)
    n = jnp.arange(win, dtype=jnp.float32)
    fmin = 32.70319566257483
    freqs = fmin * 2.0 ** (jnp.arange(n_bins, dtype=jnp.float32) / bins_per_octave)
    window = 0.5 - 0.5 * jnp.cos(2.0 * jnp.pi * n / (win - 1))
    arg = 2.0 * jnp.pi * freqs[:, None] * n[None, :] / fs2
    kr = jnp.cos(arg) * window / win
    ki = -jnp.sin(arg) * window / win
    z_real = jnp.einsum("btn,kn->bkt", frames, kr)
    z_imag = jnp.einsum("btn,kn->bkt", frames, ki)
    return z_real, z_imag


# ----------------------------------------------------------------------------
# Parameters (deterministic PyTorch-default-init style) + offline weight prep
# ----------------------------------------------------------------------------
def _prep_conv(w, b):
    """Hoisted weight preprocessing: (KH,KW,Cin,Cout) -> dense (Kpad,Cout) bf16."""
    KH, KW, Cin, Cout = w.shape
    K = KH * KW * Cin
    Kpad = _k_pad(K)
    wk = jnp.zeros((Kpad, Cout), jnp.float32).at[:K].set(w.reshape(K, Cout))
    return wk.astype(jnp.bfloat16), b.reshape(1, Cout).astype(jnp.float32)


def make_params(key, cfg):
    def conv_p(k, KH, KW, Cin, Cout):
        k1, k2 = jax.random.split(k)
        bound = 1.0 / math.sqrt(Cin * KH * KW)
        w = jax.random.uniform(k1, (KH, KW, Cin, Cout), jnp.float32, -bound, bound)
        b = jax.random.uniform(k2, (Cout,), jnp.float32, -bound, bound)
        return w, b

    in_ch2 = cfg["in_channels"] * 2
    filters, scale, maxf = cfg["filters"], cfg["filters_scale"], cfg["max_filters"]
    dilations = cfg["dilations"]
    keys = iter(jax.random.split(key, 64))

    # conv_pres: one stacked weight per octave, fused into a single pallas_call.
    pres_w, pres_b = [], []
    for _ in range(cfg["n_octaves"]):
        w, b = conv_p(next(keys), 3, 9, in_ch2, in_ch2)
        wk, b2 = _prep_conv(w, b)
        pres_w.append(wk)
        pres_b.append(b2)
    params = {"conv_pres": {"wk": jnp.stack(pres_w), "b2": jnp.stack(pres_b)}}
    pres_cfg = (3, 9, in_ch2, in_ch2, 1, 1)            # KH, KW, Cin, Cout, sw, dh

    convs, conv_cfg = [], []

    def add_conv(KH, KW, Cin, Cout, sw, dh):
        # NOTE: weight_norm(W) == W at deterministic init (g = ||V||), so plain
        # weights reproduce the reference forward exactly.
        w, b = conv_p(next(keys), KH, KW, Cin, Cout)
        wk, b2 = _prep_conv(w, b)
        convs.append({"wk": wk[None], "b2": b2[None]})
        conv_cfg.append((KH, KW, Cin, Cout, sw, dh))
        return Cout

    add_conv(3, 9, in_ch2, filters, 1, 1)
    in_chs = int(min(scale * filters, maxf))
    for i, d in enumerate(dilations):
        out_chs = int(min(scale ** (i + 1) * filters, maxf))
        in_chs = add_conv(3, 9, in_chs, out_chs, 2, d)
    out_chs = int(min(scale ** (len(dilations) + 1) * filters, maxf))
    add_conv(3, 3, in_chs, out_chs, 1, 1)
    params["convs"] = convs

    w, b = conv_p(next(keys), 3, 3, out_chs, cfg["out_channels"])
    wk, b2 = _prep_conv(w, b)
    params["conv_post"] = {"wk": wk[None], "b2": b2[None]}
    post_cfg = (3, 3, out_chs, cfg["out_channels"], 1, 1)

    layer_cfg = {"pres": pres_cfg, "convs": tuple(conv_cfg), "post": post_cfg}
    return params, layer_cfg


# ----------------------------------------------------------------------------
# Forward pass (mirrors SequenceDiscriminatorCQT.forward; normalize_volume=False)
# ----------------------------------------------------------------------------
def forward(params, x, mask, *, cfg, layer_cfg):
    fs, hop = cfg["sample_rate"], cfg["hop_length"]
    n_oct, bpo = cfg["n_octaves"], cfg["bins_per_octave"]

    x2 = resample_2x(x)                                  # resample fs -> 2*fs
    mask2 = jnp.repeat(mask, 2, axis=-1)                 # repeat_interleave(2)
    z_real, z_imag = cqt_standin(x2, fs * 2, hop, n_oct * bpo, bpo)
    B, n_bins, T = z_real.shape
    # TODO(synk): exact z_length semantics come from the external CQT wrapper;
    # approximated as valid_samples // hop_length.
    z_length = jnp.clip(mask2.sum(-1).astype(jnp.int32) // hop, 1, T)
    z_mask_t = (jnp.arange(T)[None, :] < z_length[:, None]).astype(jnp.float32)

    # z: (B, 2, T, n_bins) NCHW in the reference -> NHWC (B, T, n_bins, 2)
    z = jnp.stack([z_real, z_imag], axis=-1)             # (B, n_bins, T, 2)
    z = jnp.transpose(z, (0, 2, 1, 3)).astype(jnp.float32)
    z = z * z_mask_t[:, :, None, None]                   # z = z * z_mask

    # --- conv_pres: all octaves in ONE pallas_call (octave = grid group axis);
    # the post-concat mask multiply of the reference is folded into the kernel
    # (equivalent: the mask broadcasts over frequency/channels).
    kh, kw, cin, cout, sw, dh = layer_cfg["pres"]
    zg = z.reshape(B, T, n_oct, bpo, cin).transpose(0, 2, 1, 3, 4)  # (B,G,T,bpo,C)
    pre = params["conv_pres"]
    lat = conv2d_grouped_pallas(zg, pre["wk"], pre["b2"], z_mask_t,
                                KH=kh, KW=kw, Cin=cin, Cout=cout,
                                stride_w=sw, dilation_h=dh, apply_act=False)
    latent = lat.transpose(0, 2, 1, 3, 4).reshape(B, T, n_oct * bpo, cout)

    fmap = []
    for p, (kh, kw, cin, cout, sw, dh) in zip(params["convs"], layer_cfg["convs"]):
        latent = conv2d_grouped_pallas(latent[:, None], p["wk"], p["b2"], z_mask_t,
                                       KH=kh, KW=kw, Cin=cin, Cout=cout,
                                       stride_w=sw, dilation_h=dh,
                                       apply_act=True)[:, 0]
        fmap.append(latent)

    kh, kw, cin, cout, sw, dh = layer_cfg["post"]
    p = params["conv_post"]
    latent = conv2d_grouped_pallas(latent[:, None], p["wk"], p["b2"], z_mask_t,
                                   KH=kh, KW=kw, Cin=cin, Cout=cout,
                                   stride_w=sw, dilation_h=dh,
                                   apply_act=False)[:, 0]

    to_nchw = lambda a: jnp.transpose(a, (0, 3, 1, 2))   # back to PyTorch layout
    z_mask_out = (z_mask_t > 0)[:, None, :, None]        # (B, 1, T, 1) bool
    return to_nchw(latent), z_mask_out, [to_nchw(f) for f in fmap]


# ----------------------------------------------------------------------------
if __name__ == "__main__":
    cfg = dict(
        filters=8, max_filters=32, filters_scale=1, dilations=(1, 2),
        in_channels=1, out_channels=1,
        sample_rate=8000, hop_length=64, n_octaves=2, bins_per_octave=8,
    )
    B, L = 2, 256
    key = jax.random.PRNGKey(0)
    x = jax.random.normal(key, (B, L), dtype=jnp.float32)
    mask = jnp.ones((B, L), dtype=jnp.float32).at[1, 192:].set(0.0)

    params, layer_cfg = make_params(jax.random.PRNGKey(1), cfg)
    fwd = jax.jit(functools.partial(forward, cfg=cfg, layer_cfg=layer_cfg))

    latent, z_mask, fmap = fwd(params, x, mask)
    jax.block_until_ready((latent, z_mask, fmap))
    print("KERNEL_OK")
</pallas_src>

<mosaic_0001>
module attributes {stable_mosaic.version = 11 : i64} {
  func.func @_conv_kernel(%arg0: i32, %arg1: i32, %arg2: i32, %arg3: i32, %arg4: memref<1x1x64x128xbf16, #tpu.memory_space<vmem>>, %arg5: memref<1x128x2xbf16, #tpu.memory_space<vmem>>, %arg6: memref<1x1x2xf32, #tpu.memory_space<vmem>>, %arg7: memref<1x64x1xf32, #tpu.memory_space<vmem>>, %arg8: memref<1x1x64x2xf32, #tpu.memory_space<vmem>>, %arg9: memref<64x2xf32, #tpu.memory_space<vmem>>) attributes {dimension_semantics = [#tpu.dimension_semantics<parallel>, #tpu.dimension_semantics<parallel>, #tpu.dimension_semantics<parallel>, #tpu.dimension_semantics<arbitrary>], iteration_bounds = array<i64: 2, 2, 1, 1>, scalar_prefetch = 0 : i64, scratch_operands = 1 : i64, tpu.core_type = #tpu.core_type<tc>, window_params = [{transform_indices = @transform_0, window_bounds = array<i64: 1, 1, 64, 128>}, {transform_indices = @transform_1, window_bounds = array<i64: 1, 128, 2>}, {transform_indices = @transform_2, window_bounds = array<i64: 1, 1, 2>}, {transform_indices = @transform_3, window_bounds = array<i64: 1, 64, 1>}, {transform_indices = @transform_4, window_bounds = array<i64: 1, 1, 64, 2>}]} {
    %c0_i32 = arith.constant 0 : i32
    %0 = arith.cmpi eq, %arg3, %c0_i32 : i32
    %1 = arith.extui %0 : i1 to i32
    %c0_i32_0 = arith.constant 0 : i32
    %2 = arith.cmpi ne, %1, %c0_i32_0 : i32
    scf.if %2 {
      %cst_13 = arith.constant 0.000000e+00 : f32
      %14 = vector.broadcast %cst_13 : f32 to vector<64x2xf32>
      %c0_14 = arith.constant 0 : index
      %c0_15 = arith.constant 0 : index
      %15 = vector.load %arg9[%c0_14, %c0_15] : memref<64x2xf32, #tpu.memory_space<vmem>>, vector<64x2xf32>
      tpu.vector_store %arg9[%c0_14, %c0_15], %14 {strides = array<i32>} : memref<64x2xf32, #tpu.memory_space<vmem>>, vector<64x2xf32>,
    } else {
    }
    %c0 = arith.constant 0 : index
    %c0_1 = arith.constant 0 : index
    %3 = vector.load %arg9[%c0, %c0_1] : memref<64x2xf32, #tpu.memory_space<vmem>>, vector<64x2xf32>
    %c0_2 = arith.constant 0 : index
    %c0_3 = arith.constant 0 : index
    %c0_4 = arith.constant 0 : index
    %c0_5 = arith.constant 0 : index
    %4 = vector.load %arg4[%c0_2, %c0_3, %c0_4, %c0_5] : memref<1x1x64x128xbf16, #tpu.memory_space<vmem>>, vector<1x1x64x128xbf16>
    %5 = vector.shape_cast %4 : vector<1x1x64x128xbf16> to vector<64x128xbf16>
    %c0_6 = arith.constant 0 : index
    %c0_7 = arith.constant 0 : index
    %c0_8 = arith.constant 0 : index
    %6 = vector.load %arg5[%c0_6, %c0_7, %c0_8] : memref<1x128x2xbf16, #tpu.memory_space<vmem>>, vector<1x128x2xbf16>
    %7 = vector.shape_cast %6 : vector<1x128x2xbf16> to vector<128x2xbf16>
    %cst = arith.constant dense<0.000000e+00> : vector<64x2xf32>
    %8 = tpu.matmul %5, %7, %cst {dimension_numbers = #tpu.dot_dimension_numbers<[1], [0], [0], [1], [0, 0, 1, 1], [], []>} : vector<64x128xbf16>, vector<128x2xbf16>, vector<64x2xf32> -> vector<64x2xf32>
    %9 = arith.addf %3, %8 : vector<64x2xf32>
    %c0_9 = arith.constant 0 : index
    %c0_10 = arith.constant 0 : index
    %10 = vector.load %arg9[%c0_9, %c0_10] : memref<64x2xf32, #tpu.memory_space<vmem>>, vector<64x2xf32>
    tpu.vector_store %arg9[%c0_9, %c0_10], %9 {strides = array<i32>} : memref<64x2xf32, #tpu.memory_space<vmem>>, vector<64x2xf32>,
    %c0_i32_11 = arith.constant 0 : i32
    %11 = arith.cmpi eq, %arg3, %c0_i32_11 : i32
    %12 = arith.extui %11 : i1 to i32
    %c0_i32_12 = arith.constant 0 : i32
    %13 = arith.cmpi ne, %12, %c0_i32_12 : i32
    scf.if %13 {
      %c0_13 = arith.constant 0 : index
      %c0_14 = arith.constant 0 : index
      %14 = vector.load %arg9[%c0_13, %c0_14] : memref<64x2xf32, #tpu.memory_space<vmem>>, vector<64x2xf32>
      %c0_15 = arith.constant 0 : index
      %c0_16 = arith.constant 0 : index
      %c0_17 = arith.constant 0 : index
      %15 = vector.load %arg6[%c0_15, %c0_16, %c0_17] : memref<1x1x2xf32, #tpu.memory_space<vmem>>, vector<1x1x2xf32>
      %16 = vector.shape_cast %15 : vector<1x1x2xf32> to vector<1x2xf32>
      %17 = vector.broadcast %16 : vector<1x2xf32> to vector<64x2xf32>
      %18 = arith.addf %14, %17 : vector<64x2xf32>
      %c0_18 = arith.constant 0 : index
      %c0_19 = arith.constant 0 : index
      %c0_20 = arith.constant 0 : index
      %19 = vector.load %arg7[%c0_18, %c0_19, %c0_20] : memref<1x64x1xf32, #tpu.memory_space<vmem>>, vector<1x64x1xf32>
      %20 = vector.shape_cast %19 : vector<1x64x1xf32> to vector<64x1xf32>
      %21 = vector.broadcast %20 : vector<64x1xf32> to vector<64x2xf32>
      %22 = arith.mulf %18, %21 : vector<64x2xf32>
      %c0_21 = arith.constant 0 : index
      %c0_22 = arith.constant 0 : index
      %c0_23 = arith.constant 0 : index
      %c0_24 = arith.constant 0 : index
      %23 = vector.load %arg8[%c0_21, %c0_22, %c0_23, %c0_24] : memref<1x1x64x2xf32, #tpu.memory_space<vmem>>, vector<1x1x64x2xf32>
      %24 = vector.shape_cast %23 : vector<1x1x64x2xf32> to vector<64x2xf32>
      %25 = vector.shape_cast %22 : vector<64x2xf32> to vector<1x1x64x2xf32>
      tpu.vector_store %arg8[%c0_21, %c0_22, %c0_23, %c0_24], %25 {strides = array<i32>} : memref<1x1x64x2xf32, #tpu.memory_space<vmem>>, vector<1x1x64x2xf32>,
    } else {
    }
    return
  }
  func.func @transform_0(%arg0: i32, %arg1: i32, %arg2: i32, %arg3: i32) -> (i32, i32, i32, i32) {
    %c0_i32 = arith.constant 0 : i32
    return %arg0, %arg1, %arg2, %arg3 : i32, i32, i32, i32
  }
  func.func @transform_1(%arg0: i32, %arg1: i32, %arg2: i32, %arg3: i32) -> (i32, i32, i32) {
    %c0_i32 = arith.constant 0 : i32
    %c0_i32_0 = arith.constant 0 : i32
    return %arg1, %arg3, %c0_i32 : i32, i32, i32
  }
  func.func @transform_2(%arg0: i32, %arg1: i32, %arg2: i32, %arg3: i32) -> (i32, i32, i32) {
    %c0_i32 = arith.constant 0 : i32
    %c0_i32_0 = arith.constant 0 : i32
    %c0_i32_1 = arith.constant 0 : i32
    return %arg1, %c0_i32, %c0_i32_0 : i32, i32, i32
  }
  func.func @transform_3(%arg0: i32, %arg1: i32, %arg2: i32, %arg3: i32) -> (i32, i32, i32) {
    %c0_i32 = arith.constant 0 : i32
    %c0_i32_0 = arith.constant 0 : i32
    return %arg0, %arg2, %c0_i32 : i32, i32, i32
  }
  func.func @transform_4(%arg0: i32, %arg1: i32, %arg2: i32, %arg3: i32) -> (i32, i32, i32, i32) {
    %c0_i32 = arith.constant 0 : i32
    %c0_i32_0 = arith.constant 0 : i32
    return %arg0, %arg1, %arg2, %c0_i32 : i32, i32, i32, i32
  }
}

module attributes {stable_mosaic.version = 11 : i64} {
  func.func @_conv_kernel(%arg0: i32, %arg1: i32, %arg2: i32, %arg3: i32, %arg4: memref<1x1x128x128xbf16, #tpu.memory_space<vmem>>, %arg5: memref<1x128x8xbf16, #tpu.memory_space<vmem>>, %arg6: memref<1x1x8xf32, #tpu.memory_space<vmem>>, %arg7: memref<1x128x1xf32, #tpu.memory_space<vmem>>, %arg8: memref<1x1x128x8xf32, #tpu.memory_space<vmem>>, %arg9: memref<128x8xf32, #tpu.memory_space<vmem>>) attributes {dimension_semantics = [#tpu.dimension_semantics<parallel>, #tpu.dimension_semantics<parallel>, #tpu.dimension_semantics<parallel>, #tpu.dimension_semantics<arbitrary>], iteration_bounds = array<i64: 2, 1, 1, 1>, scalar_prefetch = 0 : i64, scratch_operands = 1 : i64, tpu.core_type = #tpu.core_type<tc>, window_params = [{transform_indices = @transform_0, window_bounds = array<i64: 1, 1, 128, 128>}, {transform_indices = @transform_1, window_bounds = array<i64: 1, 128, 8>}, {transform_indices = @transform_2, window_bounds = array<i64: 1, 1, 8>}, {transform_indices = @transform_3, window_bounds = array<i64: 1, 128, 1>}, {transform_indices = @transform_4, window_bounds = array<i64: 1, 1, 128, 8>}]} {
    %c0_i32 = arith.constant 0 : i32
    %0 = arith.cmpi eq, %arg3, %c0_i32 : i32
    %1 = arith.extui %0 : i1 to i32
    %c0_i32_0 = arith.constant 0 : i32
    %2 = arith.cmpi ne, %1, %c0_i32_0 : i32
    scf.if %2 {
      %cst_13 = arith.constant 0.000000e+00 : f32
      %14 = vector.broadcast %cst_13 : f32 to vector<128x8xf32>
      %c0_14 = arith.constant 0 : index
      %c0_15 = arith.constant 0 : index
      %15 = vector.load %arg9[%c0_14, %c0_15] : memref<128x8xf32, #tpu.memory_space<vmem>>, vector<128x8xf32>
      tpu.vector_store %arg9[%c0_14, %c0_15], %14 {strides = array<i32>} : memref<128x8xf32, #tpu.memory_space<vmem>>, vector<128x8xf32>,
    } else {
    }
    %c0 = arith.constant 0 : index
    %c0_1 = arith.constant 0 : index
    %3 = vector.load %arg9[%c0, %c0_1] : memref<128x8xf32, #tpu.memory_space<vmem>>, vector<128x8xf32>
    %c0_2 = arith.constant 0 : index
    %c0_3 = arith.constant 0 : index
    %c0_4 = arith.constant 0 : index
    %c0_5 = arith.constant 0 : index
    %4 = vector.load %arg4[%c0_2, %c0_3, %c0_4, %c0_5] : memref<1x1x128x128xbf16, #tpu.memory_space<vmem>>, vector<1x1x128x128xbf16>
    %5 = vector.shape_cast %4 : vector<1x1x128x128xbf16> to vector<128x128xbf16>
    %c0_6 = arith.constant 0 : index
    %c0_7 = arith.constant 0 : index
    %c0_8 = arith.constant 0 : index
    %6 = vector.load %arg5[%c0_6, %c0_7, %c0_8] : memref<1x128x8xbf16, #tpu.memory_space<vmem>>, vector<1x128x8xbf16>
    %7 = vector.shape_cast %6 : vector<1x128x8xbf16> to vector<128x8xbf16>
    %cst = arith.constant dense<0.000000e+00> : vector<128x8xf32>
    %8 = tpu.matmul %5, %7, %cst {dimension_numbers = #tpu.dot_dimension_numbers<[1], [0], [0], [1], [0, 0, 1, 1], [], []>} : vector<128x128xbf16>, vector<128x8xbf16>, vector<128x8xf32> -> vector<128x8xf32>
    %9 = arith.addf %3, %8 : vector<128x8xf32>
    %c0_9 = arith.constant 0 : index
    %c0_10 = arith.constant 0 : index
    %10 = vector.load %arg9[%c0_9, %c0_10] : memref<128x8xf32, #tpu.memory_space<vmem>>, vector<128x8xf32>
    tpu.vector_store %arg9[%c0_9, %c0_10], %9 {strides = array<i32>} : memref<128x8xf32, #tpu.memory_space<vmem>>, vector<128x8xf32>,
    %c0_i32_11 = arith.constant 0 : i32
    %11 = arith.cmpi eq, %arg3, %c0_i32_11 : i32
    %12 = arith.extui %11 : i1 to i32
    %c0_i32_12 = arith.constant 0 : i32
    %13 = arith.cmpi ne, %12, %c0_i32_12 : i32
    scf.if %13 {
      %c0_13 = arith.constant 0 : index
      %c0_14 = arith.constant 0 : index
      %14 = vector.load %arg9[%c0_13, %c0_14] : memref<128x8xf32, #tpu.memory_space<vmem>>, vector<128x8xf32>
      %c0_15 = arith.constant 0 : index
      %c0_16 = arith.constant 0 : index
      %c0_17 = arith.constant 0 : index
      %15 = vector.load %arg6[%c0_15, %c0_16, %c0_17] : memref<1x1x8xf32, #tpu.memory_space<vmem>>, vector<1x1x8xf32>
      %16 = vector.shape_cast %15 : vector<1x1x8xf32> to vector<1x8xf32>
      %17 = vector.broadcast %16 : vector<1x8xf32> to vector<128x8xf32>
      %18 = arith.addf %14, %17 : vector<128x8xf32>
      %c0_18 = arith.constant 0 : index
      %c0_19 = arith.constant 0 : index
      %c0_20 = arith.constant 0 : index
      %19 = vector.load %arg7[%c0_18, %c0_19, %c0_20] : memref<1x128x1xf32, #tpu.memory_space<vmem>>, vector<1x128x1xf32>
      %20 = vector.shape_cast %19 : vector<1x128x1xf32> to vector<128x1xf32>
      %21 = vector.broadcast %20 : vector<128x1xf32> to vector<128x8xf32>
      %22 = arith.mulf %18, %21 : vector<128x8xf32>
      %cst_21 = arith.constant 0.000000e+00 : f32
      %23 = vector.broadcast %cst_21 : f32 to vector<128x8xf32>
      %24 = arith.cmpf oge, %22, %23 : vector<128x8xf32>
      %cst_22 = arith.constant 1.000000e-01 : f32
      %25 = vector.broadcast %cst_22 : f32 to vector<128x8xf32>
      %26 = arith.mulf %25, %22 : vector<128x8xf32>
      %27 = arith.select %24, %22, %26 : vector<128x8xi1>, vector<128x8xf32>
      %c0_23 = arith.constant 0 : index
      %c0_24 = arith.constant 0 : index
      %c0_25 = arith.constant 0 : index
      %c0_26 = arith.constant 0 : index
      %28 = vector.load %arg8[%c0_23, %c0_24, %c0_25, %c0_26] : memref<1x1x128x8xf32, #tpu.memory_space<vmem>>, vector<1x1x128x8xf32>
      %29 = vector.shape_cast %28 : vector<1x1x128x8xf32> to vector<128x8xf32>
      %30 = vector.shape_cast %27 : vector<128x8xf32> to vector<1x1x128x8xf32>
      tpu.vector_store %arg8[%c0_23, %c0_24, %c0_25, %c0_26], %30 {strides = array<i32>} : memref<1x1x128x8xf32, #tpu.memory_space<vmem>>, vector<1x1x128x8xf32>,
    } else {
    }
    return
  }
  func.func @transform_0(%arg0: i32, %arg1: i32, %arg2: i32, %arg3: i32) -> (i32, i32, i32, i32) {
    %c0_i32 = arith.constant 0 : i32
    return %arg0, %arg1, %arg2, %arg3 : i32, i32, i32, i32
  }
  func.func @transform_1(%arg0: i32, %arg1: i32, %arg2: i32, %arg3: i32) -> (i32, i32, i32) {
    %c0_i32 = arith.constant 0 : i32
    %c0_i32_0 = arith.constant 0 : i32
    return %arg1, %arg3, %c0_i32 : i32, i32, i32
  }
  func.func @transform_2(%arg0: i32, %arg1: i32, %arg2: i32, %arg3: i32) -> (i32, i32, i32) {
    %c0_i32 = arith.constant 0 : i32
    %c0_i32_0 = arith.constant 0 : i32
    %c0_i32_1 = arith.constant 0 : i32
    return %arg1, %c0_i32, %c0_i32_0 : i32, i32, i32
  }
  func.func @transform_3(%arg0: i32, %arg1: i32, %arg2: i32, %arg3: i32) -> (i32, i32, i32) {
    %c0_i32 = arith.constant 0 : i32
    %c0_i32_0 = arith.constant 0 : i32
    return %arg0, %arg2, %c0_i32 : i32, i32, i32
  }
  func.func @transform_4(%arg0: i32, %arg1: i32, %arg2: i32, %arg3: i32) -> (i32, i32, i32, i32) {
    %c0_i32 = arith.constant 0 : i32
    %c0_i32_0 = arith.constant 0 : i32
    return %arg0, %arg1, %arg2, %c0_i32 : i32, i32, i32, i32
  }
}

module attributes {stable_mosaic.version = 11 : i64} {
  func.func @_conv_kernel(%arg0: i32, %arg1: i32, %arg2: i32, %arg3: i32, %arg4: memref<1x1x64x256xbf16, #tpu.memory_space<vmem>>, %arg5: memref<1x256x8xbf16, #tpu.memory_space<vmem>>, %arg6: memref<1x1x8xf32, #tpu.memory_space<vmem>>, %arg7: memref<1x64x1xf32, #tpu.memory_space<vmem>>, %arg8: memref<1x1x64x8xf32, #tpu.memory_space<vmem>>, %arg9: memref<64x8xf32, #tpu.memory_space<vmem>>) attributes {dimension_semantics = [#tpu.dimension_semantics<parallel>, #tpu.dimension_semantics<parallel>, #tpu.dimension_semantics<parallel>, #tpu.dimension_semantics<arbitrary>], iteration_bounds = array<i64: 2, 1, 1, 1>, scalar_prefetch = 0 : i64, scratch_operands = 1 : i64, tpu.core_type = #tpu.core_type<tc>, window_params = [{transform_indices = @transform_0, window_bounds = array<i64: 1, 1, 64, 256>}, {transform_indices = @transform_1, window_bounds = array<i64: 1, 256, 8>}, {transform_indices = @transform_2, window_bounds = array<i64: 1, 1, 8>}, {transform_indices = @transform_3, window_bounds = array<i64: 1, 64, 1>}, {transform_indices = @transform_4, window_bounds = array<i64: 1, 1, 64, 8>}]} {
    %c0_i32 = arith.constant 0 : i32
    %0 = arith.cmpi eq, %arg3, %c0_i32 : i32
    %1 = arith.extui %0 : i1 to i32
    %c0_i32_0 = arith.constant 0 : i32
    %2 = arith.cmpi ne, %1, %c0_i32_0 : i32
    scf.if %2 {
      %cst_13 = arith.constant 0.000000e+00 : f32
      %14 = vector.broadcast %cst_13 : f32 to vector<64x8xf32>
      %c0_14 = arith.constant 0 : index
      %c0_15 = arith.constant 0 : index
      %15 = vector.load %arg9[%c0_14, %c0_15] : memref<64x8xf32, #tpu.memory_space<vmem>>, vector<64x8xf32>
      tpu.vector_store %arg9[%c0_14, %c0_15], %14 {strides = array<i32>} : memref<64x8xf32, #tpu.memory_space<vmem>>, vector<64x8xf32>,
    } else {
    }
    %c0 = arith.constant 0 : index
    %c0_1 = arith.constant 0 : index
    %3 = vector.load %arg9[%c0, %c0_1] : memref<64x8xf32, #tpu.memory_space<vmem>>, vector<64x8xf32>
    %c0_2 = arith.constant 0 : index
    %c0_3 = arith.constant 0 : index
    %c0_4 = arith.constant 0 : index
    %c0_5 = arith.constant 0 : index
    %4 = vector.load %arg4[%c0_2, %c0_3, %c0_4, %c0_5] : memref<1x1x64x256xbf16, #tpu.memory_space<vmem>>, vector<1x1x64x256xbf16>
    %5 = vector.shape_cast %4 : vector<1x1x64x256xbf16> to vector<64x256xbf16>
    %c0_6 = arith.constant 0 : index
    %c0_7 = arith.constant 0 : index
    %c0_8 = arith.constant 0 : index
    %6 = vector.load %arg5[%c0_6, %c0_7, %c0_8] : memref<1x256x8xbf16, #tpu.memory_space<vmem>>, vector<1x256x8xbf16>
    %7 = vector.shape_cast %6 : vector<1x256x8xbf16> to vector<256x8xbf16>
    %cst = arith.constant dense<0.000000e+00> : vector<64x8xf32>
    %8 = tpu.matmul %5, %7, %cst {dimension_numbers = #tpu.dot_dimension_numbers<[1], [0], [0], [1], [0, 0, 1, 1], [], []>} : vector<64x256xbf16>, vector<256x8xbf16>, vector<64x8xf32> -> vector<64x8xf32>
    %9 = arith.addf %3, %8 : vector<64x8xf32>
    %c0_9 = arith.constant 0 : index
    %c0_10 = arith.constant 0 : index
    %10 = vector.load %arg9[%c0_9, %c0_10] : memref<64x8xf32, #tpu.memory_space<vmem>>, vector<64x8xf32>
    tpu.vector_store %arg9[%c0_9, %c0_10], %9 {strides = array<i32>} : memref<64x8xf32, #tpu.memory_space<vmem>>, vector<64x8xf32>,
    %c0_i32_11 = arith.constant 0 : i32
    %11 = arith.cmpi eq, %arg3, %c0_i32_11 : i32
    %12 = arith.extui %11 : i1 to i32
    %c0_i32_12 = arith.constant 0 : i32
    %13 = arith.cmpi ne, %12, %c0_i32_12 : i32
    scf.if %13 {
      %c0_13 = arith.constant 0 : index
      %c0_14 = arith.constant 0 : index
      %14 = vector.load %arg9[%c0_13, %c0_14] : memref<64x8xf32, #tpu.memory_space<vmem>>, vector<64x8xf32>
      %c0_15 = arith.constant 0 : index
      %c0_16 = arith.constant 0 : index
      %c0_17 = arith.constant 0 : index
      %15 = vector.load %arg6[%c0_15, %c0_16, %c0_17] : memref<1x1x8xf32, #tpu.memory_space<vmem>>, vector<1x1x8xf32>
      %16 = vector.shape_cast %15 : vector<1x1x8xf32> to vector<1x8xf32>
      %17 = vector.broadcast %16 : vector<1x8xf32> to vector<64x8xf32>
      %18 = arith.addf %14, %17 : vector<64x8xf32>
      %c0_18 = arith.constant 0 : index
      %c0_19 = arith.constant 0 : index
      %c0_20 = arith.constant 0 : index
      %19 = vector.load %arg7[%c0_18, %c0_19, %c0_20] : memref<1x64x1xf32, #tpu.memory_space<vmem>>, vector<1x64x1xf32>
      %20 = vector.shape_cast %19 : vector<1x64x1xf32> to vector<64x1xf32>
      %21 = vector.broadcast %20 : vector<64x1xf32> to vector<64x8xf32>
      %22 = arith.mulf %18, %21 : vector<64x8xf32>
      %cst_21 = arith.constant 0.000000e+00 : f32
      %23 = vector.broadcast %cst_21 : f32 to vector<64x8xf32>
      %24 = arith.cmpf oge, %22, %23 : vector<64x8xf32>
      %cst_22 = arith.constant 1.000000e-01 : f32
      %25 = vector.broadcast %cst_22 : f32 to vector<64x8xf32>
      %26 = arith.mulf %25, %22 : vector<64x8xf32>
      %27 = arith.select %24, %22, %26 : vector<64x8xi1>, vector<64x8xf32>
      %c0_23 = arith.constant 0 : index
      %c0_24 = arith.constant 0 : index
      %c0_25 = arith.constant 0 : index
      %c0_26 = arith.constant 0 : index
      %28 = vector.load %arg8[%c0_23, %c0_24, %c0_25, %c0_26] : memref<1x1x64x8xf32, #tpu.memory_space<vmem>>, vector<1x1x64x8xf32>
      %29 = vector.shape_cast %28 : vector<1x1x64x8xf32> to vector<64x8xf32>
      %30 = vector.shape_cast %27 : vector<64x8xf32> to vector<1x1x64x8xf32>
      tpu.vector_store %arg8[%c0_23, %c0_24, %c0_25, %c0_26], %30 {strides = array<i32>} : memref<1x1x64x8xf32, #tpu.memory_space<vmem>>, vector<1x1x64x8xf32>,
    } else {
    }
    return
  }
  func.func @transform_0(%arg0: i32, %arg1: i32, %arg2: i32, %arg3: i32) -> (i32, i32, i32, i32) {
    %c0_i32 = arith.constant 0 : i32
    return %arg0, %arg1, %arg2, %arg3 : i32, i32, i32, i32
  }
  func.func @transform_1(%arg0: i32, %arg1: i32, %arg2: i32, %arg3: i32) -> (i32, i32, i32) {
    %c0_i32 = arith.constant 0 : i32
    %c0_i32_0 = arith.constant 0 : i32
    return %arg1, %arg3, %c0_i32 : i32, i32, i32
  }
  func.func @transform_2(%arg0: i32, %arg1: i32, %arg2: i32, %arg3: i32) -> (i32, i32, i32) {
    %c0_i32 = arith.constant 0 : i32
    %c0_i32_0 = arith.constant 0 : i32
    %c0_i32_1 = arith.constant 0 : i32
    return %arg1, %c0_i32, %c0_i32_0 : i32, i32, i32
  }
  func.func @transform_3(%arg0: i32, %arg1: i32, %arg2: i32, %arg3: i32) -> (i32, i32, i32) {
    %c0_i32 = arith.constant 0 : i32
    %c0_i32_0 = arith.constant 0 : i32
    return %arg0, %arg2, %c0_i32 : i32, i32, i32
  }
  func.func @transform_4(%arg0: i32, %arg1: i32, %arg2: i32, %arg3: i32) -> (i32, i32, i32, i32) {
    %c0_i32 = arith.constant 0 : i32
    %c0_i32_0 = arith.constant 0 : i32
    return %arg0, %arg1, %arg2, %c0_i32 : i32, i32, i32, i32
  }
}

module attributes {stable_mosaic.version = 11 : i64} {
  func.func @_conv_kernel(%arg0: i32, %arg1: i32, %arg2: i32, %arg3: i32, %arg4: memref<1x1x32x256xbf16, #tpu.memory_space<vmem>>, %arg5: memref<1x256x8xbf16, #tpu.memory_space<vmem>>, %arg6: memref<1x1x8xf32, #tpu.memory_space<vmem>>, %arg7: memref<1x32x1xf32, #tpu.memory_space<vmem>>, %arg8: memref<1x1x32x8xf32, #tpu.memory_space<vmem>>, %arg9: memref<32x8xf32, #tpu.memory_space<vmem>>) attributes {dimension_semantics = [#tpu.dimension_semantics<parallel>, #tpu.dimension_semantics<parallel>, #tpu.dimension_semantics<parallel>, #tpu.dimension_semantics<arbitrary>], iteration_bounds = array<i64: 2, 1, 1, 1>, scalar_prefetch = 0 : i64, scratch_operands = 1 : i64, tpu.core_type = #tpu.core_type<tc>, window_params = [{transform_indices = @transform_0, window_bounds = array<i64: 1, 1, 32, 256>}, {transform_indices = @transform_1, window_bounds = array<i64: 1, 256, 8>}, {transform_indices = @transform_2, window_bounds = array<i64: 1, 1, 8>}, {transform_indices = @transform_3, window_bounds = array<i64: 1, 32, 1>}, {transform_indices = @transform_4, window_bounds = array<i64: 1, 1, 32, 8>}]} {
    %c0_i32 = arith.constant 0 : i32
    %0 = arith.cmpi eq, %arg3, %c0_i32 : i32
    %1 = arith.extui %0 : i1 to i32
    %c0_i32_0 = arith.constant 0 : i32
    %2 = arith.cmpi ne, %1, %c0_i32_0 : i32
    scf.if %2 {
      %cst_13 = arith.constant 0.000000e+00 : f32
      %14 = vector.broadcast %cst_13 : f32 to vector<32x8xf32>
      %c0_14 = arith.constant 0 : index
      %c0_15 = arith.constant 0 : index
      %15 = vector.load %arg9[%c0_14, %c0_15] : memref<32x8xf32, #tpu.memory_space<vmem>>, vector<32x8xf32>
      tpu.vector_store %arg9[%c0_14, %c0_15], %14 {strides = array<i32>} : memref<32x8xf32, #tpu.memory_space<vmem>>, vector<32x8xf32>,
    } else {
    }
    %c0 = arith.constant 0 : index
    %c0_1 = arith.constant 0 : index
    %3 = vector.load %arg9[%c0, %c0_1] : memref<32x8xf32, #tpu.memory_space<vmem>>, vector<32x8xf32>
    %c0_2 = arith.constant 0 : index
    %c0_3 = arith.constant 0 : index
    %c0_4 = arith.constant 0 : index
    %c0_5 = arith.constant 0 : index
    %4 = vector.load %arg4[%c0_2, %c0_3, %c0_4, %c0_5] : memref<1x1x32x256xbf16, #tpu.memory_space<vmem>>, vector<1x1x32x256xbf16>
    %5 = vector.shape_cast %4 : vector<1x1x32x256xbf16> to vector<32x256xbf16>
    %c0_6 = arith.constant 0 : index
    %c0_7 = arith.constant 0 : index
    %c0_8 = arith.constant 0 : index
    %6 = vector.load %arg5[%c0_6, %c0_7, %c0_8] : memref<1x256x8xbf16, #tpu.memory_space<vmem>>, vector<1x256x8xbf16>
    %7 = vector.shape_cast %6 : vector<1x256x8xbf16> to vector<256x8xbf16>
    %cst = arith.constant dense<0.000000e+00> : vector<32x8xf32>
    %8 = tpu.matmul %5, %7, %cst {dimension_numbers = #tpu.dot_dimension_numbers<[1], [0], [0], [1], [0, 0, 1, 1], [], []>} : vector<32x256xbf16>, vector<256x8xbf16>, vector<32x8xf32> -> vector<32x8xf32>
    %9 = arith.addf %3, %8 : vector<32x8xf32>
    %c0_9 = arith.constant 0 : index
    %c0_10 = arith.constant 0 : index
    %10 = vector.load %arg9[%c0_9, %c0_10] : memref<32x8xf32, #tpu.memory_space<vmem>>, vector<32x8xf32>
    tpu.vector_store %arg9[%c0_9, %c0_10], %9 {strides = array<i32>} : memref<32x8xf32, #tpu.memory_space<vmem>>, vector<32x8xf32>,
    %c0_i32_11 = arith.constant 0 : i32
    %11 = arith.cmpi eq, %arg3, %c0_i32_11 : i32
    %12 = arith.extui %11 : i1 to i32
    %c0_i32_12 = arith.constant 0 : i32
    %13 = arith.cmpi ne, %12, %c0_i32_12 : i32
    scf.if %13 {
      %c0_13 = arith.constant 0 : index
      %c0_14 = arith.constant 0 : index
      %14 = vector.load %arg9[%c0_13, %c0_14] : memref<32x8xf32, #tpu.memory_space<vmem>>, vector<32x8xf32>
      %c0_15 = arith.constant 0 : index
      %c0_16 = arith.constant 0 : index
      %c0_17 = arith.constant 0 : index
      %15 = vector.load %arg6[%c0_15, %c0_16, %c0_17] : memref<1x1x8xf32, #tpu.memory_space<vmem>>, vector<1x1x8xf32>
      %16 = vector.shape_cast %15 : vector<1x1x8xf32> to vector<1x8xf32>
      %17 = vector.broadcast %16 : vector<1x8xf32> to vector<32x8xf32>
      %18 = arith.addf %14, %17 : vector<32x8xf32>
      %c0_18 = arith.constant 0 : index
      %c0_19 = arith.constant 0 : index
      %c0_20 = arith.constant 0 : index
      %19 = vector.load %arg7[%c0_18, %c0_19, %c0_20] : memref<1x32x1xf32, #tpu.memory_space<vmem>>, vector<1x32x1xf32>
      %20 = vector.shape_cast %19 : vector<1x32x1xf32> to vector<32x1xf32>
      %21 = vector.broadcast %20 : vector<32x1xf32> to vector<32x8xf32>
      %22 = arith.mulf %18, %21 : vector<32x8xf32>
      %cst_21 = arith.constant 0.000000e+00 : f32
      %23 = vector.broadcast %cst_21 : f32 to vector<32x8xf32>
      %24 = arith.cmpf oge, %22, %23 : vector<32x8xf32>
      %cst_22 = arith.constant 1.000000e-01 : f32
      %25 = vector.broadcast %cst_22 : f32 to vector<32x8xf32>
      %26 = arith.mulf %25, %22 : vector<32x8xf32>
      %27 = arith.select %24, %22, %26 : vector<32x8xi1>, vector<32x8xf32>
      %c0_23 = arith.constant 0 : index
      %c0_24 = arith.constant 0 : index
      %c0_25 = arith.constant 0 : index
      %c0_26 = arith.constant 0 : index
      %28 = vector.load %arg8[%c0_23, %c0_24, %c0_25, %c0_26] : memref<1x1x32x8xf32, #tpu.memory_space<vmem>>, vector<1x1x32x8xf32>
      %29 = vector.shape_cast %28 : vector<1x1x32x8xf32> to vector<32x8xf32>
      %30 = vector.shape_cast %27 : vector<32x8xf32> to vector<1x1x32x8xf32>
      tpu.vector_store %arg8[%c0_23, %c0_24, %c0_25, %c0_26], %30 {strides = array<i32>} : memref<1x1x32x8xf32, #tpu.memory_space<vmem>>, vector<1x1x32x8xf32>,
    } else {
    }
    return
  }
  func.func @transform_0(%arg0: i32, %arg1: i32, %arg2: i32, %arg3: i32) -> (i32, i32, i32, i32) {
    %c0_i32 = arith.constant 0 : i32
    return %arg0, %arg1, %arg2, %arg3 : i32, i32, i32, i32
  }
  func.func @transform_1(%arg0: i32, %arg1: i32, %arg2: i32, %arg3: i32) -> (i32, i32, i32) {
    %c0_i32 = arith.constant 0 : i32
    %c0_i32_0 = arith.constant 0 : i32
    return %arg1, %arg3, %c0_i32 : i32, i32, i32
  }
  func.func @transform_2(%arg0: i32, %arg1: i32, %arg2: i32, %arg3: i32) -> (i32, i32, i32) {
    %c0_i32 = arith.constant 0 : i32
    %c0_i32_0 = arith.constant 0 : i32
    %c0_i32_1 = arith.constant 0 : i32
    return %arg1, %c0_i32, %c0_i32_0 : i32, i32, i32
  }
  func.func @transform_3(%arg0: i32, %arg1: i32, %arg2: i32, %arg3: i32) -> (i32, i32, i32) {
    %c0_i32 = arith.constant 0 : i32
    %c0_i32_0 = arith.constant 0 : i32
    return %arg0, %arg2, %c0_i32 : i32, i32, i32
  }
  func.func @transform_4(%arg0: i32, %arg1: i32, %arg2: i32, %arg3: i32) -> (i32, i32, i32, i32) {
    %c0_i32 = arith.constant 0 : i32
    %c0_i32_0 = arith.constant 0 : i32
    return %arg0, %arg1, %arg2, %c0_i32 : i32, i32, i32, i32
  }
}

module attributes {stable_mosaic.version = 11 : i64} {
  func.func @_conv_kernel(%arg0: i32, %arg1: i32, %arg2: i32, %arg3: i32, %arg4: memref<1x1x32x128xbf16, #tpu.memory_space<vmem>>, %arg5: memref<1x128x8xbf16, #tpu.memory_space<vmem>>, %arg6: memref<1x1x8xf32, #tpu.memory_space<vmem>>, %arg7: memref<1x32x1xf32, #tpu.memory_space<vmem>>, %arg8: memref<1x1x32x8xf32, #tpu.memory_space<vmem>>, %arg9: memref<32x8xf32, #tpu.memory_space<vmem>>) attributes {dimension_semantics = [#tpu.dimension_semantics<parallel>, #tpu.dimension_semantics<parallel>, #tpu.dimension_semantics<parallel>, #tpu.dimension_semantics<arbitrary>], iteration_bounds = array<i64: 2, 1, 1, 1>, scalar_prefetch = 0 : i64, scratch_operands = 1 : i64, tpu.core_type = #tpu.core_type<tc>, window_params = [{transform_indices = @transform_0, window_bounds = array<i64: 1, 1, 32, 128>}, {transform_indices = @transform_1, window_bounds = array<i64: 1, 128, 8>}, {transform_indices = @transform_2, window_bounds = array<i64: 1, 1, 8>}, {transform_indices = @transform_3, window_bounds = array<i64: 1, 32, 1>}, {transform_indices = @transform_4, window_bounds = array<i64: 1, 1, 32, 8>}]} {
    %c0_i32 = arith.constant 0 : i32
    %0 = arith.cmpi eq, %arg3, %c0_i32 : i32
    %1 = arith.extui %0 : i1 to i32
    %c0_i32_0 = arith.constant 0 : i32
    %2 = arith.cmpi ne, %1, %c0_i32_0 : i32
    scf.if %2 {
      %cst_13 = arith.constant 0.000000e+00 : f32
      %14 = vector.broadcast %cst_13 : f32 to vector<32x8xf32>
      %c0_14 = arith.constant 0 : index
      %c0_15 = arith.constant 0 : index
      %15 = vector.load %arg9[%c0_14, %c0_15] : memref<32x8xf32, #tpu.memory_space<vmem>>, vector<32x8xf32>
      tpu.vector_store %arg9[%c0_14, %c0_15], %14 {strides = array<i32>} : memref<32x8xf32, #tpu.memory_space<vmem>>, vector<32x8xf32>,
    } else {
    }
    %c0 = arith.constant 0 : index
    %c0_1 = arith.constant 0 : index
    %3 = vector.load %arg9[%c0, %c0_1] : memref<32x8xf32, #tpu.memory_space<vmem>>, vector<32x8xf32>
    %c0_2 = arith.constant 0 : index
    %c0_3 = arith.constant 0 : index
    %c0_4 = arith.constant 0 : index
    %c0_5 = arith.constant 0 : index
    %4 = vector.load %arg4[%c0_2, %c0_3, %c0_4, %c0_5] : memref<1x1x32x128xbf16, #tpu.memory_space<vmem>>, vector<1x1x32x128xbf16>
    %5 = vector.shape_cast %4 : vector<1x1x32x128xbf16> to vector<32x128xbf16>
    %c0_6 = arith.constant 0 : index
    %c0_7 = arith.constant 0 : index
    %c0_8 = arith.constant 0 : index
    %6 = vector.load %arg5[%c0_6, %c0_7, %c0_8] : memref<1x128x8xbf16, #tpu.memory_space<vmem>>, vector<1x128x8xbf16>
    %7 = vector.shape_cast %6 : vector<1x128x8xbf16> to vector<128x8xbf16>
    %cst = arith.constant dense<0.000000e+00> : vector<32x8xf32>
    %8 = tpu.matmul %5, %7, %cst {dimension_numbers = #tpu.dot_dimension_numbers<[1], [0], [0], [1], [0, 0, 1, 1], [], []>} : vector<32x128xbf16>, vector<128x8xbf16>, vector<32x8xf32> -> vector<32x8xf32>
    %9 = arith.addf %3, %8 : vector<32x8xf32>
    %c0_9 = arith.constant 0 : index
    %c0_10 = arith.constant 0 : index
    %10 = vector.load %arg9[%c0_9, %c0_10] : memref<32x8xf32, #tpu.memory_space<vmem>>, vector<32x8xf32>
    tpu.vector_store %arg9[%c0_9, %c0_10], %9 {strides = array<i32>} : memref<32x8xf32, #tpu.memory_space<vmem>>, vector<32x8xf32>,
    %c0_i32_11 = arith.constant 0 : i32
    %11 = arith.cmpi eq, %arg3, %c0_i32_11 : i32
    %12 = arith.extui %11 : i1 to i32
    %c0_i32_12 = arith.constant 0 : i32
    %13 = arith.cmpi ne, %12, %c0_i32_12 : i32
    scf.if %13 {
      %c0_13 = arith.constant 0 : index
      %c0_14 = arith.constant 0 : index
      %14 = vector.load %arg9[%c0_13, %c0_14] : memref<32x8xf32, #tpu.memory_space<vmem>>, vector<32x8xf32>
      %c0_15 = arith.constant 0 : index
      %c0_16 = arith.constant 0 : index
      %c0_17 = arith.constant 0 : index
      %15 = vector.load %arg6[%c0_15, %c0_16, %c0_17] : memref<1x1x8xf32, #tpu.memory_space<vmem>>, vector<1x1x8xf32>
      %16 = vector.shape_cast %15 : vector<1x1x8xf32> to vector<1x8xf32>
      %17 = vector.broadcast %16 : vector<1x8xf32> to vector<32x8xf32>
      %18 = arith.addf %14, %17 : vector<32x8xf32>
      %c0_18 = arith.constant 0 : index
      %c0_19 = arith.constant 0 : index
      %c0_20 = arith.constant 0 : index
      %19 = vector.load %arg7[%c0_18, %c0_19, %c0_20] : memref<1x32x1xf32, #tpu.memory_space<vmem>>, vector<1x32x1xf32>
      %20 = vector.shape_cast %19 : vector<1x32x1xf32> to vector<32x1xf32>
      %21 = vector.broadcast %20 : vector<32x1xf32> to vector<32x8xf32>
      %22 = arith.mulf %18, %21 : vector<32x8xf32>
      %cst_21 = arith.constant 0.000000e+00 : f32
      %23 = vector.broadcast %cst_21 : f32 to vector<32x8xf32>
      %24 = arith.cmpf oge, %22, %23 : vector<32x8xf32>
      %cst_22 = arith.constant 1.000000e-01 : f32
      %25 = vector.broadcast %cst_22 : f32 to vector<32x8xf32>
      %26 = arith.mulf %25, %22 : vector<32x8xf32>
      %27 = arith.select %24, %22, %26 : vector<32x8xi1>, vector<32x8xf32>
      %c0_23 = arith.constant 0 : index
      %c0_24 = arith.constant 0 : index
      %c0_25 = arith.constant 0 : index
      %c0_26 = arith.constant 0 : index
      %28 = vector.load %arg8[%c0_23, %c0_24, %c0_25, %c0_26] : memref<1x1x32x8xf32, #tpu.memory_space<vmem>>, vector<1x1x32x8xf32>
      %29 = vector.shape_cast %28 : vector<1x1x32x8xf32> to vector<32x8xf32>
      %30 = vector.shape_cast %27 : vector<32x8xf32> to vector<1x1x32x8xf32>
      tpu.vector_store %arg8[%c0_23, %c0_24, %c0_25, %c0_26], %30 {strides = array<i32>} : memref<1x1x32x8xf32, #tpu.memory_space<vmem>>, vector<1x1x32x8xf32>,
    } else {
    }
    return
  }
  func.func @transform_0(%arg0: i32, %arg1: i32, %arg2: i32, %arg3: i32) -> (i32, i32, i32, i32) {
    %c0_i32 = arith.constant 0 : i32
    return %arg0, %arg1, %arg2, %arg3 : i32, i32, i32, i32
  }
  func.func @transform_1(%arg0: i32, %arg1: i32, %arg2: i32, %arg3: i32) -> (i32, i32, i32) {
    %c0_i32 = arith.constant 0 : i32
    %c0_i32_0 = arith.constant 0 : i32
    return %arg1, %arg3, %c0_i32 : i32, i32, i32
  }
  func.func @transform_2(%arg0: i32, %arg1: i32, %arg2: i32, %arg3: i32) -> (i32, i32, i32) {
    %c0_i32 = arith.constant 0 : i32
    %c0_i32_0 = arith.constant 0 : i32
    %c0_i32_1 = arith.constant 0 : i32
    return %arg1, %c0_i32, %c0_i32_0 : i32, i32, i32
  }
  func.func @transform_3(%arg0: i32, %arg1: i32, %arg2: i32, %arg3: i32) -> (i32, i32, i32) {
    %c0_i32 = arith.constant 0 : i32
    %c0_i32_0 = arith.constant 0 : i32
    return %arg0, %arg2, %c0_i32 : i32, i32, i32
  }
  func.func @transform_4(%arg0: i32, %arg1: i32, %arg2: i32, %arg3: i32) -> (i32, i32, i32, i32) {
    %c0_i32 = arith.constant 0 : i32
    %c0_i32_0 = arith.constant 0 : i32
    return %arg0, %arg1, %arg2, %c0_i32 : i32, i32, i32, i32
  }
}

module attributes {stable_mosaic.version = 11 : i64} {
  func.func @_conv_kernel(%arg0: i32, %arg1: i32, %arg2: i32, %arg3: i32, %arg4: memref<1x1x32x128xbf16, #tpu.memory_space<vmem>>, %arg5: memref<1x128x1xbf16, #tpu.memory_space<vmem>>, %arg6: memref<1x1x1xf32, #tpu.memory_space<vmem>>, %arg7: memref<1x32x1xf32, #tpu.memory_space<vmem>>, %arg8: memref<1x1x32x1xf32, #tpu.memory_space<vmem>>, %arg9: memref<32x1xf32, #tpu.memory_space<vmem>>) attributes {dimension_semantics = [#tpu.dimension_semantics<parallel>, #tpu.dimension_semantics<parallel>, #tpu.dimension_semantics<parallel>, #tpu.dimension_semantics<arbitrary>], iteration_bounds = array<i64: 2, 1, 1, 1>, scalar_prefetch = 0 : i64, scratch_operands = 1 : i64, tpu.core_type = #tpu.core_type<tc>, window_params = [{transform_indices = @transform_0, window_bounds = array<i64: 1, 1, 32, 128>}, {transform_indices = @transform_1, window_bounds = array<i64: 1, 128, 1>}, {transform_indices = @transform_2, window_bounds = array<i64: 1, 1, 1>}, {transform_indices = @transform_3, window_bounds = array<i64: 1, 32, 1>}, {transform_indices = @transform_4, window_bounds = array<i64: 1, 1, 32, 1>}]} {
    %c0_i32 = arith.constant 0 : i32
    %0 = arith.cmpi eq, %arg3, %c0_i32 : i32
    %1 = arith.extui %0 : i1 to i32
    %c0_i32_0 = arith.constant 0 : i32
    %2 = arith.cmpi ne, %1, %c0_i32_0 : i32
    scf.if %2 {
      %cst_13 = arith.constant 0.000000e+00 : f32
      %14 = vector.broadcast %cst_13 : f32 to vector<32x1xf32>
      %c0_14 = arith.constant 0 : index
      %c0_15 = arith.constant 0 : index
      %15 = vector.load %arg9[%c0_14, %c0_15] : memref<32x1xf32, #tpu.memory_space<vmem>>, vector<32x1xf32>
      tpu.vector_store %arg9[%c0_14, %c0_15], %14 {strides = array<i32>} : memref<32x1xf32, #tpu.memory_space<vmem>>, vector<32x1xf32>,
    } else {
    }
    %c0 = arith.constant 0 : index
    %c0_1 = arith.constant 0 : index
    %3 = vector.load %arg9[%c0, %c0_1] : memref<32x1xf32, #tpu.memory_space<vmem>>, vector<32x1xf32>
    %c0_2 = arith.constant 0 : index
    %c0_3 = arith.constant 0 : index
    %c0_4 = arith.constant 0 : index
    %c0_5 = arith.constant 0 : index
    %4 = vector.load %arg4[%c0_2, %c0_3, %c0_4, %c0_5] : memref<1x1x32x128xbf16, #tpu.memory_space<vmem>>, vector<1x1x32x128xbf16>
    %5 = vector.shape_cast %4 : vector<1x1x32x128xbf16> to vector<32x128xbf16>
    %c0_6 = arith.constant 0 : index
    %c0_7 = arith.constant 0 : index
    %c0_8 = arith.constant 0 : index
    %6 = vector.load %arg5[%c0_6, %c0_7, %c0_8] : memref<1x128x1xbf16, #tpu.memory_space<vmem>>, vector<1x128x1xbf16>
    %7 = vector.shape_cast %6 : vector<1x128x1xbf16> to vector<128x1xbf16>
    %cst = arith.constant dense<0.000000e+00> : vector<32x1xf32>
    %8 = tpu.matmul %5, %7, %cst {dimension_numbers = #tpu.dot_dimension_numbers<[1], [0], [0], [1], [0, 0, 1, 1], [], []>} : vector<32x128xbf16>, vector<128x1xbf16>, vector<32x1xf32> -> vector<32x1xf32>
    %9 = arith.addf %3, %8 : vector<32x1xf32>
    %c0_9 = arith.constant 0 : index
    %c0_10 = arith.constant 0 : index
    %10 = vector.load %arg9[%c0_9, %c0_10] : memref<32x1xf32, #tpu.memory_space<vmem>>, vector<32x1xf32>
    tpu.vector_store %arg9[%c0_9, %c0_10], %9 {strides = array<i32>} : memref<32x1xf32, #tpu.memory_space<vmem>>, vector<32x1xf32>,
    %c0_i32_11 = arith.constant 0 : i32
    %11 = arith.cmpi eq, %arg3, %c0_i32_11 : i32
    %12 = arith.extui %11 : i1 to i32
    %c0_i32_12 = arith.constant 0 : i32
    %13 = arith.cmpi ne, %12, %c0_i32_12 : i32
    scf.if %13 {
      %c0_13 = arith.constant 0 : index
      %c0_14 = arith.constant 0 : index
      %14 = vector.load %arg9[%c0_13, %c0_14] : memref<32x1xf32, #tpu.memory_space<vmem>>, vector<32x1xf32>
      %c0_15 = arith.constant 0 : index
      %c0_16 = arith.constant 0 : index
      %c0_17 = arith.constant 0 : index
      %15 = vector.load %arg6[%c0_15, %c0_16, %c0_17] : memref<1x1x1xf32, #tpu.memory_space<vmem>>, vector<1x1x1xf32>
      %16 = vector.shape_cast %15 : vector<1x1x1xf32> to vector<1x1xf32>
      %17 = vector.broadcast %16 : vector<1x1xf32> to vector<32x1xf32>
      %18 = arith.addf %14, %17 : vector<32x1xf32>
      %c0_18 = arith.constant 0 : index
      %c0_19 = arith.constant 0 : index
      %c0_20 = arith.constant 0 : index
      %19 = vector.load %arg7[%c0_18, %c0_19, %c0_20] : memref<1x32x1xf32, #tpu.memory_space<vmem>>, vector<1x32x1xf32>
      %20 = vector.shape_cast %19 : vector<1x32x1xf32> to vector<32x1xf32>
      %21 = arith.mulf %18, %20 : vector<32x1xf32>
      %c0_21 = arith.constant 0 : index
      %c0_22 = arith.constant 0 : index
      %c0_23 = arith.constant 0 : index
      %c0_24 = arith.constant 0 : index
      %22 = vector.load %arg8[%c0_21, %c0_22, %c0_23, %c0_24] : memref<1x1x32x1xf32, #tpu.memory_space<vmem>>, vector<1x1x32x1xf32>
      %23 = vector.shape_cast %22 : vector<1x1x32x1xf32> to vector<32x1xf32>
      %24 = vector.shape_cast %21 : vector<32x1xf32> to vector<1x1x32x1xf32>
      tpu.vector_store %arg8[%c0_21, %c0_22, %c0_23, %c0_24], %24 {strides = array<i32>} : memref<1x1x32x1xf32, #tpu.memory_space<vmem>>, vector<1x1x32x1xf32>,
    } else {
    }
    return
  }
  func.func @transform_0(%arg0: i32, %arg1: i32, %arg2: i32, %arg3: i32) -> (i32, i32, i32, i32) {
    %c0_i32 = arith.constant 0 : i32
    return %arg0, %arg1, %arg2, %arg3 : i32, i32, i32, i32
  }
  func.func @transform_1(%arg0: i32, %arg1: i32, %arg2: i32, %arg3: i32) -> (i32, i32, i32) {
    %c0_i32 = arith.constant 0 : i32
    %c0_i32_0 = arith.constant 0 : i32
    return %arg1, %arg3, %c0_i32 : i32, i32, i32
  }
  func.func @transform_2(%arg0: i32, %arg1: i32, %arg2: i32, %arg3: i32) -> (i32, i32, i32) {
    %c0_i32 = arith.constant 0 : i32
    %c0_i32_0 = arith.constant 0 : i32
    %c0_i32_1 = arith.constant 0 : i32
    return %arg1, %c0_i32, %c0_i32_0 : i32, i32, i32
  }
  func.func @transform_3(%arg0: i32, %arg1: i32, %arg2: i32, %arg3: i32) -> (i32, i32, i32) {
    %c0_i32 = arith.constant 0 : i32
    %c0_i32_0 = arith.constant 0 : i32
    return %arg0, %arg2, %c0_i32 : i32, i32, i32
  }
  func.func @transform_4(%arg0: i32, %arg1: i32, %arg2: i32, %arg3: i32) -> (i32, i32, i32, i32) {
    %c0_i32 = arith.constant 0 : i32
    %c0_i32_0 = arith.constant 0 : i32
    return %arg0, %arg1, %arg2, %c0_i32 : i32, i32, i32, i32
  }
}

</mosaic_0001>

<bundles_post_ra>
// kernel: forward.6
= control target key start
LH: loop header
LB: loop body
LE: loop exit
PB: predicated region body
PF: predicated region fallthrough
CT: control target
= control target key end

     0   :  { %s1035_s15 = smov 0   ;;  %s1037_s16 = smov 0   ;;  %s1157_s0 = inlined_call_operand.vmem [shape: bf16[2,2,64,128], index: 0, kind: input, shape index: {}]   ;;  %s1158_s1 = inlined_call_operand.vmem [shape: bf16[2,128,2], index: 1, kind: input, shape index: {}]   ;;  %s1159_s2 = inlined_call_operand.vmem [shape: f32[2,1,2], index: 2, kind: input, shape index: {}]   ;;  %s1160_s3 = inlined_call_operand.vmem [shape: f32[2,64,1], index: 3, kind: input, shape index: {}]   ;;  %s1161_s4 = inlined_call_operand.vmem [shape: f32[2,2,64,2], index: 4, kind: output, shape index: {}]  }
   0x1   :  { %s1039_s17 = smov 0   ;;  %s1041_s18 = smov 0  }
   0x2   :  { %s1043_s19 = smov 0  }
   0x3 LB: > { %s36_s20 = sadd.s32 1, %s998_s17  ;;  %s40_s21 = sadd.s32 1, %s1002_s18  ;;  %s1006_s19 = sphi %s1043_s19, %s14_s19   ;;  %s1002_s18 = sphi %s1041_s18, %s1165_s18   ;;  %s998_s17 = sphi %s1039_s17, %s1164_s17   ;;  %s994_s16 = sphi %s1037_s16, %s1163_s16   ;;  %s990_s15 = sphi %s1035_s15, %s1162_s15  }
   0x4   : > { %p38_p0 = scmp.ge.s32.totalorder %s36_s20, 2  ;;  %p832_p1 = scmp.ge.s32.totalorder %s1006_s19, 1 }
   0x5   : > { %p252_p2 = scmp.lt.s32.totalorder %s1006_s19, 5 }
   0x6   : > { %s1167_s20 = smov (%p38_p0, %s36_s20), 0  ;;  %s1169_s21 = smov (!%p38_p0, %s40_s21), %s1002_s18 }
   0x7   : > { %p253_p3 = pnand %p832_p1, %p252_p2  ;;  %p42_p4 = scmp.ge.s32.totalorder %s1169_s21, 2 }
   0x8   : > { %p321_p5 = scmp.lt.s32.totalorder (!%p253_p3), %s990_s15, 1  ;;  %p319_p6 = scmp.lt.s32.totalorder (!%p253_p3), %s994_s16, 1  ;;  %v1008_v0 = vmov (!%p253_p3), 0   ;;  %vm377_vm0 = vcmask (!%p253_p3), 15360   ;;  %v1009_v17 = vmov (!%p253_p3), 0.0  }
   0x9   : > { %s1171_s21 = smov (%p42_p4, %s1169_s21), 0  ;;  %256 = sbr.rel (%p253_p3) target bundleno = 283 (0x11b), region = 36 }
   0xa   : > { %955 = vset.pattern.permute.xlu1 (!%p253_p3), %v1008_v0  ;;  %954 = vset.pattern.permute.xlu0 (!%p253_p3), %v1008_v0  ;;  %380 = vst.msk [vmem:[#allocation2 + $0x10] sm:$0xff] (!%p253_p3), %vm377_vm0, %v1009_v17  ;;  %378 = vst.msk [vmem:[#allocation2] sm:$0xff] (!%p253_p3), %vm377_vm0, %v1009_v17 }
   0xb   : > { %379 = vst.msk [vmem:[#allocation2 + $0x8] sm:$0xff] (!%p253_p3), %vm377_vm0, %v1009_v17  ;;  %381 = vst.msk [vmem:[#allocation2 + $0x18] sm:$0xff] (!%p253_p3), %vm377_vm0, %v1009_v17 }
   0xc   : > { %382 = vst.msk [vmem:[#allocation2 + $0x20] sm:$0xff] (!%p253_p3), %vm377_vm0, %v1009_v17  ;;  %383 = vst.msk [vmem:[#allocation2 + $0x28] sm:$0xff] (!%p253_p3), %vm377_vm0, %v1009_v17 }
   0xd   : > { %384 = vst.msk [vmem:[#allocation2 + $0x30] sm:$0xff] (!%p253_p3), %vm377_vm0, %v1009_v17  ;;  %385 = vst.msk [vmem:[#allocation2 + $0x38] sm:$0xff] (!%p253_p3), %vm377_vm0, %v1009_v17 }
  0x10   : > { %s1173_s15 = smov (!%p321_p5, %s990_s15), 1  ;;  %s1175_s16 = smov (!%p319_p6, %s994_s16), 1 }
  0x11   : > { %s858_s22 = sshll.u32 %s1173_s15, 6  ;;  %s833_s23 = sshll.u32 %s1173_s15, 3  ;;  %v388_v24 = vld [vmem:[#allocation2 + $0x10] sm:$0xff]  ;;  %v386_v28 = vld [vmem:[#allocation2] sm:$0xff] }
  0x12   : > { %s1072_s26 = scalar_lea.vmem %s1158_s1, %s858_s22  ;;  %s834_s27 = sshll.u32 %s1175_s16, 4  ;;  %v389_v32 = vld [vmem:[#allocation2 + $0x18] sm:$0xff]  ;;  %v387_v38 = vld [vmem:[#allocation2 + $0x8] sm:$0xff] }
  0x13   : > { %v956_v1 = vld [vmem:[%s1072_s26] sm:$0xff]   ;;  %s1075_s28 = sadd.s32 %s834_s27, %s833_s23  ;;  %v957_v2 = vld [vmem:[%s1072_s26 + $0x8] sm:$0xff]   ;;  %v958_v3 = vld [vmem:[%s1072_s26 + $0x10] sm:$0xff]   ;;  %s859_s7 = sshll.u32 %s1175_s16, 6 }
  0x14   : > { %872 = vmatprep.subr.bf16.mxu0 %v956_v1  ;;  %896 = vmatprep.subr.bf16.mxu1 %v956_v1  ;;  %s835_s29 = sshll.u32 %s1075_s28, 2  ;;  %v959_v4 = vld [vmem:[%s1072_s26 + $0x18] sm:$0xff]   ;;  %s1091_s10 = scalar_lea.vmem %s1160_s3, %s859_s7  ;;  %v960_v7 = vld [vmem:[%s1072_s26 + $0x20] sm:$0xff]   ;;  %v961_v12 = vld [vmem:[%s1072_s26 + $0x28] sm:$0xff]  }
  0x15   : > { %873 = vmatpush3.bf16.msra.mxu0 %v956_v1  ;;  %904 = vmatpush3.bf16.msra.mxu1 %v956_v1  ;;  %s1083_s6 = scalar_lea.vmem %s1157_s0, %s835_s29  ;;  %v600_v8 = vld [vmem:[%s1091_s10 + $0x10] sm:$0xff]  ;;  %v598_v9 = vld [vmem:[%s1091_s10] sm:$0xff]  ;;  %v601_v10 = vld [vmem:[%s1091_s10 + $0x18] sm:$0xff]  ;;  %s347_s13 = scalar_lea.vmem %s1159_s2, %s1173_s15 }
  0x16   : > { %874 = vmatprep.subr.bf16.mxu0 %v957_v2  ;;  %897 = vmatprep.subr.bf16.mxu1 %v957_v2  ;;  %v964_v5 = vld [vmem:[%s1083_s6] sm:$0xff]   ;;  %v965_v6 = vld [vmem:[%s1083_s6 + $0x10] sm:$0xff]   ;;  %v599_v11 = vld [vmem:[%s1091_s10 + $0x8] sm:$0xff]  ;;  %s842_s14 = sshll.u32 %s1075_s28, 3 }
  0x17   : > { %888 = vmatprep.mubr.bf16.mxu0 %v964_v5  ;;  %892 = vmatprep.mubr.bf16.mxu1 %v965_v6  ;;  %v603_v13 = vld [vmem:[%s1091_s10 + $0x28] sm:$0xff]  ;;  %v602_v14 = vld [vmem:[%s1091_s10 + $0x20] sm:$0xff]  ;;  %v962_v15 = vld [vmem:[%s1072_s26 + $0x30] sm:$0xff]   ;;  %s370_s23 = scalar_lea.vmem %s1161_s4, %s842_s14 }
  0x18   : > { %618 = vperm.xlu1 %955, %v600_v8   ;;  %608 = vperm.xlu0 %954, %v598_v9   ;;  %v605_v16 = vld [vmem:[%s1091_s10 + $0x38] sm:$0xff]  ;;  %v604_v18 = vld [vmem:[%s1091_s10 + $0x30] sm:$0xff]  ;;  %v966_v20 = vld [vmem:[%s1083_s6 + $0x8] sm:$0xff]  }
  0x19   : > { %875 = vmatpush3.bf16.msra.mxu0 %v957_v2  ;;  %905 = vmatpush3.bf16.msra.mxu1 %v957_v2  ;;  %v963_v19 = vld [vmem:[%s1072_s26 + $0x38] sm:$0xff]   ;;  %v392_v25 = vld [vmem:[#allocation2 + $0x30] sm:$0xff]  ;;  %v390_v29 = vld [vmem:[#allocation2 + $0x20] sm:$0xff] }
  0x1a   : > { %876 = vmatprep.subr.bf16.mxu0 %v958_v3  ;;  %898 = vmatprep.subr.bf16.mxu1 %v958_v3  ;;  %v967_v21 = vld [vmem:[%s1083_s6 + $0x18] sm:$0xff]   ;;  %v391_v39 = vld [vmem:[#allocation2 + $0x28] sm:$0xff]  ;;  %v855_v52 = vld [vmem:[%s347_s13] ss:$0 sm:$0xff] }
  0x1b   : > { %v393_v33 = vld [vmem:[#allocation2 + $0x38] sm:$0xff] }
  0x1c   : > { %623 = vperm.xlu1 %955, %v601_v10   ;;  %613 = vperm.xlu0 %954, %v599_v11  }
  0x1d   : > { %877 = vmatpush3.bf16.msra.mxu0 %v958_v3  ;;  %906 = vmatpush3.bf16.msra.mxu1 %v958_v3 }
  0x1e   : > { %878 = vmatprep.subr.bf16.mxu0 %v959_v4  ;;  %899 = vmatprep.subr.bf16.mxu1 %v959_v4 }
  0x20   : > { %633 = vperm.xlu1 %955, %v603_v13   ;;  %628 = vperm.xlu0 %954, %v602_v14  }
  0x21   : > { %879 = vmatpush3.bf16.msra.mxu0 %v959_v4  ;;  %907 = vmatpush3.bf16.msra.mxu1 %v959_v4 }
  0x22   : > { %880 = vmatprep.subr.bf16.mxu0 %v960_v7  ;;  %900 = vmatprep.subr.bf16.mxu1 %v960_v7 }
  0x24   : > { %643 = vperm.xlu1 %955, %v605_v16   ;;  %638 = vperm.xlu0 %954, %v604_v18  }
  0x25   : > { %881 = vmatpush3.bf16.msra.mxu0 %v960_v7  ;;  %908 = vmatpush3.bf16.msra.mxu1 %v960_v7 }
  0x26   : > { %882 = vmatprep.subr.bf16.mxu0 %v961_v12  ;;  %901 = vmatprep.subr.bf16.mxu1 %v961_v12 }
  0x29   : > { %883 = vmatpush3.bf16.msra.mxu0 %v961_v12  ;;  %909 = vmatpush3.bf16.msra.mxu1 %v961_v12 }
  0x2a   : > { %884 = vmatprep.subr.bf16.mxu0 %v962_v15  ;;  %902 = vmatprep.subr.bf16.mxu1 %v962_v15 }
  0x2d   : > { %885 = vmatpush3.bf16.msra.mxu0 %v962_v15  ;;  %910 = vmatpush3.bf16.msra.mxu1 %v962_v15 }
  0x2e   : > { %886 = vmatprep.subr.bf16.mxu0 %v963_v19  ;;  %903 = vmatprep.subr.bf16.mxu1 %v963_v19 }
  0x31   : > { %887 = vmatpush3.bf16.msra.mxu0 %v963_v19  ;;  %911 = vmatpush3.bf16.msra.mxu1 %v963_v19 }
  0x34   : > { %889 = vmatmul.mubr.bf16.vlgmr.msra.gmra.mrb[0].mxu0 %v966_v20  ;;  %893 = vmatmul.mubr.bf16.vlgmr.msra.gmra.mrb[0].mxu1 %v967_v21 }
  0x97   : > { %v619_v22 = vpop.permute.xlu1 %618  ;;  %v609_v23 = vpop.permute.xlu0 %608 }
  0x9b   : > { %v624_v26 = vpop.permute.xlu1 %623  ;;  %v1115_v27 = vpop.permute.xlu0 %613 }
  0x9f   : > { %v629_v50 = vpop.permute.xlu0 %628  ;;  %v634_v51 = vpop.permute.xlu1 %633 }
  0xa3   : > { %v639_v63 = vpop.permute.xlu0 %638  ;;  %v644_v6 = vpop.permute.xlu1 %643 }
 0x107   : > { %v890_v30 = vpop.f32.mrb[0].mxu0  ;;  %v894_v31 = vpop.f32.mrb[0].mxu1 }
 0x108   : > { %v557_v34 = vadd.f32 %v890_v30, %v388_v24  ;;  %v561_v35 = vadd.f32 %v894_v31, %v392_v25  ;;  %v524_v36 = vpop.f32.mrb[1].mxu0  ;;  %v540_v37 = vpop.f32.mrb[1].mxu1 }
 0x109   : > { %v555_v40 = vadd.f32 %v524_v36, %v386_v28  ;;  %v559_v41 = vadd.f32 %v540_v37, %v390_v29  ;;  %v891_v42 = vpop.f32.mrb[2].mxu0  ;;  %v895_v43 = vpop.f32.mrb[2].mxu1 }
 0x10a   : > { %566 = vst.msk [vmem:[#allocation2 + $0x10] sm:$0xff] %vm377_vm0, %v557_v34  ;;  %570 = vst.msk [vmem:[#allocation2 + $0x30] sm:$0xff] %vm377_vm0, %v561_v35  ;;  %v558_v44 = vadd.f32 %v891_v42, %v389_v32  ;;  %v562_v45 = vadd.f32 %v895_v43, %v393_v33  ;;  %v527_v46 = vpop.f32.mrb[3].mxu0  ;;  %v543_v47 = vpop.f32.mrb[3].mxu1 }
 0x10b   : > { %564 = vst.msk [vmem:[#allocation2] sm:$0xff] %vm377_vm0, %v555_v40  ;;  %568 = vst.msk [vmem:[#allocation2 + $0x20] sm:$0xff] %vm377_vm0, %v559_v41  ;;  %v556_v48 = vadd.f32 %v527_v46, %v387_v38  ;;  %v560_v49 = vadd.f32 %v543_v47, %v391_v39 }
 0x10c   : > { %567 = vst.msk [vmem:[#allocation2 + $0x18] sm:$0xff] %vm377_vm0, %v558_v44  ;;  %571 = vst.msk [vmem:[#allocation2 + $0x38] sm:$0xff] %vm377_vm0, %v562_v45 }
 0x10d   : > { %565 = vst.msk [vmem:[#allocation2 + $0x8] sm:$0xff] %vm377_vm0, %v556_v48  ;;  %569 = vst.msk [vmem:[#allocation2 + $0x28] sm:$0xff] %vm377_vm0, %v560_v49 }
 0x111   : > { %v577_v53 = vld [vmem:[#allocation2 + $0x10] sm:$0xff] }
 0x112   : > { %v581_v54 = vld [vmem:[#allocation2 + $0x30] sm:$0xff]  ;;  %v575_v55 = vld [vmem:[#allocation2] sm:$0xff]  ;;  %v592_v57 = vadd.f32 %v855_v52, %v577_v53 }
 0x113   : > { %v579_v56 = vld [vmem:[#allocation2 + $0x20] sm:$0xff]  ;;  %v596_v58 = vadd.f32 %v855_v52, %v581_v54  ;;  %v578_v59 = vld [vmem:[#allocation2 + $0x18] sm:$0xff]  ;;  %v590_v61 = vadd.f32 %v855_v52, %v575_v55 }
 0x114   : > { %v582_v60 = vld [vmem:[#allocation2 + $0x38] sm:$0xff]  ;;  %v594_v62 = vadd.f32 %v855_v52, %v579_v56  ;;  %v593_v0 = vadd.f32 %v855_v52, %v578_v59  ;;  %v648_v2 = vmul.f32 %v619_v22, %v592_v57  ;;  %v576_v4 = vld [vmem:[#allocation2 + $0x8] sm:$0xff] }
 0x115   : > { %v597_v1 = vadd.f32 %v855_v52, %v582_v60  ;;  %v652_v3 = vmul.f32 %v639_v63, %v596_v58  ;;  %v580_v5 = vld [vmem:[#allocation2 + $0x28] sm:$0xff]  ;;  %v646_v7 = vmul.f32 %v609_v23, %v590_v61  ;;  %v591_v9 = vadd.f32 %v855_v52, %v576_v4 }
 0x116   : > { %v650_v8 = vmul.f32 %v629_v50, %v594_v62  ;;  %v595_v10 = vadd.f32 %v855_v52, %v580_v5  ;;  %v649_v11 = vmul.f32 %v624_v26, %v593_v0  ;;  %656 = vst.msk [vmem:[%s370_s23 + $0x10] sm:$0xff] %vm377_vm0, %v648_v2 }
 0x117   : > { %v653_v12 = vmul.f32 %v644_v6, %v597_v1  ;;  %660 = vst.msk [vmem:[%s370_s23 + $0x30] sm:$0xff] %vm377_vm0, %v652_v3  ;;  %654 = vst.msk [vmem:[%s370_s23] sm:$0xff] %vm377_vm0, %v646_v7  ;;  %v647_v13 = vmul.f32 %v1115_v27, %v591_v9 }
 0x118   : > { %658 = vst.msk [vmem:[%s370_s23 + $0x20] sm:$0xff] %vm377_vm0, %v650_v8  ;;  %v651_v14 = vmul.f32 %v634_v51, %v595_v10  ;;  %657 = vst.msk [vmem:[%s370_s23 + $0x18] sm:$0xff] %vm377_vm0, %v649_v11 }
 0x119   : > { %661 = vst.msk [vmem:[%s370_s23 + $0x38] sm:$0xff] %vm377_vm0, %v653_v12  ;;  %655 = vst.msk [vmem:[%s370_s23 + $0x8] sm:$0xff] %vm377_vm0, %v647_v13 }
 0x11a   : > { %659 = vst.msk [vmem:[%s370_s23 + $0x28] sm:$0xff] %vm377_vm0, %v651_v14 }
 0x11b PF: > { %s14_s19 = sadd.s32 1, %s1006_s19   ;;  %s1162_s15 = smov %s998_s17 }
 0x11c   : > { %p11_p7 = scmp.ge.s32.totalorder %s14_s19, 6   ;;  %s1163_s16 = smov %s1002_s18 }
 0x11d   : > { %s1164_s17 = smov %s1167_s20  ;;  %s1165_s18 = smov %s1171_s21 }
 0x11e   :  { %13 = sbr.rel (!%p11_p7) target bundleno = 3 (0x3), region = 83 }

// kernel: forward.7
= control target key start
LH: loop header
LB: loop body
LE: loop exit
PB: predicated region body
PF: predicated region fallthrough
CT: control target
= control target key end

     0   :  { %s1249_s15 = smov 0   ;;  %s1251_s16 = smov 0   ;;  %s1462_s0 = inlined_call_operand.vmem [shape: bf16[2,1,128,128], index: 0, kind: input, shape index: {}]   ;;  %s1463_s1 = inlined_call_operand.vmem [shape: bf16[1,128,8], index: 1, kind: input, shape index: {}]   ;;  %s1464_s2 = inlined_call_operand.vmem [shape: f32[1,1,8], index: 2, kind: input, shape index: {}]   ;;  %s1465_s3 = inlined_call_operand.vmem [shape: f32[2,128,1], index: 3, kind: input, shape index: {}]   ;;  %s1466_s4 = inlined_call_operand.vmem [shape: f32[2,1,128,8], index: 4, kind: output, shape index: {}]  }
   0x1   :  { %s1253_s17 = smov 0  }
   0x2 LB: > { %s40_s18 = sadd.s32 1, %s1216_s16  ;;  %p1061_p0 = scmp.ge.s32.totalorder %s1220_s17, 1  ;;  %s1220_s17 = sphi %s1253_s17, %s14_s17   ;;  %s1216_s16 = sphi %s1251_s16, %s1468_s16   ;;  %s1212_s15 = sphi %s1249_s15, %s1467_s15  }
   0x3   : > { %p42_p1 = scmp.ge.s32.totalorder %s40_s18, 2  ;;  %p252_p2 = scmp.lt.s32.totalorder %s1220_s17, 3 }
   0x5   : > { %s1470_s18 = smov (%p42_p1, %s40_s18), 0  ;;  %p253_p3 = pnand %p1061_p0, %p252_p2 }
   0x6   : > { %v1182_v0 = vld [vmem:[%s1463_s1] sm:$0xff] (!%p253_p3)   ;;  %p319_p4 = scmp.lt.s32.totalorder (!%p253_p3), %s1212_s15, 1  ;;  %v1183_v1 = vld [vmem:[%s1463_s1 + $0x8] sm:$0xff] (!%p253_p3)   ;;  %v1184_v2 = vld [vmem:[%s1463_s1 + $0x10] sm:$0xff] (!%p253_p3)   ;;  %v1222_v3 = vmov (!%p253_p3), 0   ;;  %vm377_vm0 = vcmask (!%p253_p3), 64512  }
   0x7   : > { %256 = sbr.rel (%p253_p3) target bundleno = 286 (0x11e), region = 36  ;;  %1106 = vmatprep.subr.bf16.mxu0 (!%p253_p3), %v1182_v0  ;;  %1138 = vmatprep.subr.bf16.mxu1 (!%p253_p3), %v1182_v0  ;;  %v1185_v4 = vld [vmem:[%s1463_s1 + $0x18] sm:$0xff] (!%p253_p3)   ;;  %v1186_v7 = vld [vmem:[%s1463_s1 + $0x20] sm:$0xff] (!%p253_p3)   ;;  %v1187_v8 = vld [vmem:[%s1463_s1 + $0x28] sm:$0xff] (!%p253_p3)   ;;  %v1223_v33 = vmov (!%p253_p3), 0.0  }
   0x8   : > { %1107 = vmatpush3.bf16.msra.mxu0 (!%p253_p3), %v1182_v0  ;;  %1146 = vmatpush3.bf16.msra.mxu1 (!%p253_p3), %v1182_v0  ;;  %v1188_v13 = vld [vmem:[%s1463_s1 + $0x30] sm:$0xff] (!%p253_p3)   ;;  %v1189_v16 = vld [vmem:[%s1463_s1 + $0x38] sm:$0xff] (!%p253_p3)   ;;  %380 = vst.msk [vmem:[#allocation2 + $0x10] sm:$0xff] (!%p253_p3), %vm377_vm0, %v1223_v33  ;;  %378 = vst.msk [vmem:[#allocation2] sm:$0xff] (!%p253_p3), %vm377_vm0, %v1223_v33 }
   0x9   : > { %1108 = vmatprep.subr.bf16.mxu0 (!%p253_p3), %v1183_v1  ;;  %1139 = vmatprep.subr.bf16.mxu1 (!%p253_p3), %v1183_v1  ;;  %379 = vst.msk [vmem:[#allocation2 + $0x8] sm:$0xff] (!%p253_p3), %vm377_vm0, %v1223_v33  ;;  %381 = vst.msk [vmem:[#allocation2 + $0x18] sm:$0xff] (!%p253_p3), %vm377_vm0, %v1223_v33 }
   0xa   : > { %1181 = vset.pattern.permute.xlu1 (!%p253_p3), %v1222_v3  ;;  %1180 = vset.pattern.permute.xlu0 (!%p253_p3), %v1222_v3  ;;  %382 = vst.msk [vmem:[#allocation2 + $0x20] sm:$0xff] (!%p253_p3), %vm377_vm0, %v1223_v33  ;;  %383 = vst.msk [vmem:[#allocation2 + $0x28] sm:$0xff] (!%p253_p3), %vm377_vm0, %v1223_v33 }
   0xb   : > { %384 = vst.msk [vmem:[#allocation2 + $0x30] sm:$0xff] (!%p253_p3), %vm377_vm0, %v1223_v33  ;;  %385 = vst.msk [vmem:[#allocation2 + $0x38] sm:$0xff] (!%p253_p3), %vm377_vm0, %v1223_v33 }
   0xc   : > { %1109 = vmatpush3.bf16.msra.mxu0 (!%p253_p3), %v1183_v1  ;;  %1147 = vmatpush3.bf16.msra.mxu1 (!%p253_p3), %v1183_v1  ;;  %386 = vst.msk [vmem:[#allocation2 + $0x40] sm:$0xff] (!%p253_p3), %vm377_vm0, %v1223_v33  ;;  %387 = vst.msk [vmem:[#allocation2 + $0x48] sm:$0xff] (!%p253_p3), %vm377_vm0, %v1223_v33 }
   0xd   : > { %1110 = vmatprep.subr.bf16.mxu0 (!%p253_p3), %v1184_v2  ;;  %1140 = vmatprep.subr.bf16.mxu1 (!%p253_p3), %v1184_v2  ;;  %388 = vst.msk [vmem:[#allocation2 + $0x50] sm:$0xff] (!%p253_p3), %vm377_vm0, %v1223_v33  ;;  %389 = vst.msk [vmem:[#allocation2 + $0x58] sm:$0xff] (!%p253_p3), %vm377_vm0, %v1223_v33 }
   0xe   : > { %s1472_s15 = smov (!%p319_p4, %s1212_s15), 1  ;;  %390 = vst.msk [vmem:[#allocation2 + $0x60] sm:$0xff] %vm377_vm0, %v1223_v33  ;;  %391 = vst.msk [vmem:[#allocation2 + $0x68] sm:$0xff] %vm377_vm0, %v1223_v33 }
   0xf   : > { %s1087_s25 = sshll.u32 %s1472_s15, 6  ;;  %s1088_s5 = sshll.u32 %s1472_s15, 7  ;;  %392 = vst.msk [vmem:[#allocation2 + $0x70] sm:$0xff] %vm377_vm0, %v1223_v33  ;;  %393 = vst.msk [vmem:[#allocation2 + $0x78] sm:$0xff] %vm377_vm0, %v1223_v33  ;;  %v396_v41 = vld [vmem:[#allocation2 + $0x10] sm:$0xff]  ;;  %v394_v45 = vld [vmem:[#allocation2] sm:$0xff] }
  0x10   : > { %s1282_s28 = scalar_lea.vmem %s1462_s0, %s1087_s25  ;;  %1111 = vmatpush3.bf16.msra.mxu0 %v1184_v2  ;;  %1148 = vmatpush3.bf16.msra.mxu1 %v1184_v2  ;;  %s1298_s10 = scalar_lea.vmem %s1465_s3, %s1088_s5  ;;  %v397_v49 = vld [vmem:[#allocation2 + $0x18] sm:$0xff]  ;;  %v395_v55 = vld [vmem:[#allocation2 + $0x8] sm:$0xff] }
  0x11   : > { %v1190_v5 = vld [vmem:[%s1282_s28] sm:$0xff]   ;;  %1112 = vmatprep.subr.bf16.mxu0 %v1185_v4  ;;  %1141 = vmatprep.subr.bf16.mxu1 %v1185_v4  ;;  %v712_v9 = vld [vmem:[%s1298_s10 + $0x10] sm:$0xff]  ;;  %v713_v11 = vld [vmem:[%s1298_s10 + $0x18] sm:$0xff]  ;;  %s1404_s25 = scalar_lea.vmem %s1466_s4, %s1088_s5 }
  0x12   : > { %v1191_v6 = vld [vmem:[%s1282_s28 + $0x20] sm:$0xff]   ;;  %1122 = vmatprep.mubr.bf16.mxu0 %v1190_v5  ;;  %738 = vperm.xlu1 %1181, %v712_v9   ;;  %v711_v12 = vld [vmem:[%s1298_s10 + $0x8] sm:$0xff]  ;;  %v717_v17 = vld [vmem:[%s1298_s10 + $0x38] sm:$0xff] }
  0x13   : > { %1130 = vmatprep.mubr.bf16.mxu1 %v1191_v6  ;;  %v710_v10 = vld [vmem:[%s1298_s10] sm:$0xff]  ;;  %v715_v14 = vld [vmem:[%s1298_s10 + $0x28] sm:$0xff]  ;;  %v716_v18 = vld [vmem:[%s1298_s10 + $0x30] sm:$0xff] }
  0x14   : > { %1113 = vmatpush3.bf16.msra.mxu0 %v1185_v4  ;;  %1149 = vmatpush3.bf16.msra.mxu1 %v1185_v4  ;;  %v714_v15 = vld [vmem:[%s1298_s10 + $0x20] sm:$0xff]  ;;  %v1192_v19 = vld [vmem:[%s1282_s28 + $0x8] sm:$0xff]   ;;  %v1194_v23 = vld [vmem:[%s1282_s28 + $0x10] sm:$0xff]  }
  0x15   : > { %1114 = vmatprep.subr.bf16.mxu0 %v1186_v7  ;;  %1142 = vmatprep.subr.bf16.mxu1 %v1186_v7  ;;  %v1193_v20 = vld [vmem:[%s1282_s28 + $0x28] sm:$0xff]   ;;  %v718_v22 = vld [vmem:[%s1298_s10 + $0x40] sm:$0xff]  ;;  %v1195_v24 = vld [vmem:[%s1282_s28 + $0x30] sm:$0xff]  }
  0x16   : > { %728 = vperm.xlu0 %1180, %v710_v10   ;;  %743 = vperm.xlu1 %1181, %v713_v11   ;;  %v719_v21 = vld [vmem:[%s1298_s10 + $0x48] sm:$0xff]  ;;  %v721_v25 = vld [vmem:[%s1298_s10 + $0x58] sm:$0xff]  ;;  %v720_v26 = vld [vmem:[%s1298_s10 + $0x50] sm:$0xff] }
  0x17   : > { %v1196_v27 = vld [vmem:[%s1282_s28 + $0x18] sm:$0xff]   ;;  %v723_v29 = vld [vmem:[%s1298_s10 + $0x68] sm:$0xff]  ;;  %v722_v30 = vld [vmem:[%s1298_s10 + $0x60] sm:$0xff] }
  0x18   : > { %1115 = vmatpush3.bf16.msra.mxu0 %v1186_v7  ;;  %1150 = vmatpush3.bf16.msra.mxu1 %v1186_v7  ;;  %v1197_v28 = vld [vmem:[%s1282_s28 + $0x38] sm:$0xff]   ;;  %v724_v32 = vld [vmem:[%s1298_s10 + $0x70] sm:$0xff]  ;;  %v402_v46 = vld [vmem:[#allocation2 + $0x40] sm:$0xff] }
  0x19   : > { %1116 = vmatprep.subr.bf16.mxu0 %v1187_v8  ;;  %1143 = vmatprep.subr.bf16.mxu1 %v1187_v8  ;;  %v725_v31 = vld [vmem:[%s1298_s10 + $0x78] sm:$0xff]  ;;  %v404_v42 = vld [vmem:[#allocation2 + $0x50] sm:$0xff]  ;;  %v403_v56 = vld [vmem:[#allocation2 + $0x48] sm:$0xff] }
  0x1a   : > { %733 = vperm.xlu0 %1180, %v711_v12   ;;  %753 = vperm.xlu1 %1181, %v715_v14   ;;  %v405_v50 = vld [vmem:[#allocation2 + $0x58] sm:$0xff]  ;;  %v400_v3 = vld [vmem:[#allocation2 + $0x30] sm:$0xff]  ;;  %v398_v7 = vld [vmem:[#allocation2 + $0x20] sm:$0xff] }
  0x1b   : > { %v408_v4 = vld [vmem:[#allocation2 + $0x70] sm:$0xff]  ;;  %v1378_v9 = vld [vmem:[%s1464_s2] ss:$0 sm:$0xff]  ;;  %v401_v12 = vld [vmem:[#allocation2 + $0x38] sm:$0xff] }
  0x1c   : > { %1117 = vmatpush3.bf16.msra.mxu0 %v1187_v8  ;;  %1151 = vmatpush3.bf16.msra.mxu1 %v1187_v8  ;;  %v406_v8 = vld [vmem:[#allocation2 + $0x60] sm:$0xff] }
  0x1d   : > { %1118 = vmatprep.subr.bf16.mxu0 %v1188_v13  ;;  %1144 = vmatprep.subr.bf16.mxu1 %v1188_v13 }
  0x1e   : > { %748 = vperm.xlu0 %1180, %v714_v15   ;;  %763 = vperm.xlu1 %1181, %v717_v17  }
  0x20   : > { %1119 = vmatpush3.bf16.msra.mxu0 %v1188_v13  ;;  %1152 = vmatpush3.bf16.msra.mxu1 %v1188_v13  ;;  %v409_v13 = vld [vmem:[#allocation2 + $0x78] sm:$0xff] }
  0x21   : > { %1120 = vmatprep.subr.bf16.mxu0 %v1189_v16  ;;  %1145 = vmatprep.subr.bf16.mxu1 %v1189_v16 }
  0x22   : > { %758 = vperm.xlu0 %1180, %v716_v18   ;;  %773 = vperm.xlu1 %1181, %v719_v21   ;;  %v399_v18 = vld [vmem:[#allocation2 + $0x28] sm:$0xff] }
  0x24   : > { %1121 = vmatpush3.bf16.msra.mxu0 %v1189_v16  ;;  %1153 = vmatpush3.bf16.msra.mxu1 %v1189_v16 }
  0x26   : > { %768 = vperm.xlu0 %1180, %v718_v22   ;;  %783 = vperm.xlu1 %1181, %v721_v25  }
  0x27   : > { %1123 = vmatmul.mubr.bf16.vlgmr.msra.gmra.mrb[0].mxu0 %v1192_v19  ;;  %1131 = vmatmul.mubr.bf16.vlgmr.msra.gmra.mrb[0].mxu1 %v1193_v20  ;;  %v407_v19 = vld [vmem:[#allocation2 + $0x68] sm:$0xff] }
  0x28   : > { %1126 = vmatprep.mubr.bf16.mxu0 %v1194_v23  ;;  %1134 = vmatprep.mubr.bf16.mxu1 %v1195_v24 }
  0x2a   : > { %778 = vperm.xlu0 %1180, %v720_v26   ;;  %793 = vperm.xlu1 %1181, %v723_v29  }
  0x2e   : > { %788 = vperm.xlu0 %1180, %v722_v30   ;;  %803 = vperm.xlu1 %1181, %v725_v31  }
  0x2f   : > { %1127 = vmatmul.mubr.bf16.gmra.mrb[4].mxu0 %v1196_v27  ;;  %1135 = vmatmul.mubr.bf16.gmra.mrb[4].mxu1 %v1197_v28 }
  0x32   : > { %798 = vperm.xlu0 %1180, %v724_v32  }
  0x91   : > { %v1349_v35 = vpop.permute.xlu1 %738 }
  0x95   : > { %v1347_v34 = vpop.permute.xlu0 %728  ;;  %v1353_v37 = vpop.permute.xlu1 %743 }
  0x99   : > { %v1351_v36 = vpop.permute.xlu0 %733  ;;  %v1357_v39 = vpop.permute.xlu1 %753 }
  0x9d   : > { %v1355_v38 = vpop.permute.xlu0 %748  ;;  %v1361_v43 = vpop.permute.xlu1 %763 }
  0xa1   : > { %v1359_v40 = vpop.permute.xlu0 %758  ;;  %v1373_v5 = vpop.permute.xlu1 %773 }
  0xa5   : > { %v1363_v44 = vpop.permute.xlu0 %768 }
  0xa9   : > { %v779_v6 = vpop.permute.xlu0 %778 }
  0xfa   : > { %v1124_v47 = vpop.f32.mrb[0].mxu0  ;;  %v1132_v48 = vpop.f32.mrb[0].mxu1 }
  0xfb   : > { %v637_v51 = vadd.f32 %v1124_v47, %v396_v41  ;;  %v645_v52 = vadd.f32 %v1132_v48, %v404_v42  ;;  %v572_v53 = vpop.f32.mrb[1].mxu0  ;;  %v604_v54 = vpop.f32.mrb[1].mxu1 }
  0xfc   : > { %v635_v57 = vadd.f32 %v572_v53, %v394_v45  ;;  %v643_v58 = vadd.f32 %v604_v54, %v402_v46  ;;  %v1125_v59 = vpop.f32.mrb[2].mxu0  ;;  %v1133_v60 = vpop.f32.mrb[2].mxu1 }
  0xfd   : > { %654 = vst.msk [vmem:[#allocation2 + $0x10] sm:$0xff] %vm377_vm0, %v637_v51  ;;  %662 = vst.msk [vmem:[#allocation2 + $0x50] sm:$0xff] %vm377_vm0, %v645_v52  ;;  %v638_v61 = vadd.f32 %v1125_v59, %v397_v49  ;;  %v646_v62 = vadd.f32 %v1133_v60, %v405_v50  ;;  %v575_v63 = vpop.f32.mrb[3].mxu0  ;;  %v607_v0 = vpop.f32.mrb[3].mxu1 }
  0xfe   : > { %652 = vst.msk [vmem:[#allocation2] sm:$0xff] %vm377_vm0, %v635_v57  ;;  %660 = vst.msk [vmem:[#allocation2 + $0x40] sm:$0xff] %vm377_vm0, %v643_v58  ;;  %v636_v1 = vadd.f32 %v575_v63, %v395_v55  ;;  %v644_v2 = vadd.f32 %v607_v0, %v403_v56  ;;  %v784_v55 = vpop.permute.xlu1 %783  ;;  %v789_v59 = vpop.permute.xlu0 %788 }
  0xff   : > { %655 = vst.msk [vmem:[#allocation2 + $0x18] sm:$0xff] %vm377_vm0, %v638_v61  ;;  %663 = vst.msk [vmem:[#allocation2 + $0x58] sm:$0xff] %vm377_vm0, %v646_v62 }
 0x100   : > { %653 = vst.msk [vmem:[#allocation2 + $0x8] sm:$0xff] %vm377_vm0, %v636_v1  ;;  %661 = vst.msk [vmem:[#allocation2 + $0x48] sm:$0xff] %vm377_vm0, %v644_v2 }
 0x102   : > { %v1128_v10 = vpop.f32.mrb[4].mxu0  ;;  %v1136_v11 = vpop.f32.mrb[4].mxu1 }
 0x103   : > { %v641_v14 = vadd.f32 %v1128_v10, %v400_v3  ;;  %v649_v15 = vadd.f32 %v1136_v11, %v408_v4  ;;  %v588_v16 = vpop.f32.mrb[5].mxu0  ;;  %v620_v17 = vpop.f32.mrb[5].mxu1 }
 0x104   : > { %v673_v20 = vld [vmem:[#allocation2 + $0x10] sm:$0xff]  ;;  %v639_v22 = vadd.f32 %v588_v16, %v398_v7  ;;  %v647_v23 = vadd.f32 %v620_v17, %v406_v8  ;;  %v1129_v24 = vpop.f32.mrb[6].mxu0  ;;  %v1137_v25 = vpop.f32.mrb[6].mxu1 }
 0x105   : > { %v681_v21 = vld [vmem:[#allocation2 + $0x50] sm:$0xff]  ;;  %v696_v26 = vadd.f32 %v1378_v9, %v673_v20  ;;  %v671_v28 = vld [vmem:[#allocation2] sm:$0xff]  ;;  %658 = vst.msk [vmem:[#allocation2 + $0x30] sm:$0xff] %vm377_vm0, %v641_v14  ;;  %666 = vst.msk [vmem:[#allocation2 + $0x70] sm:$0xff] %vm377_vm0, %v649_v15  ;;  %v642_v30 = vadd.f32 %v1129_v24, %v401_v12  ;;  %v650_v31 = vadd.f32 %v1137_v25, %v409_v13  ;;  %v591_v32 = vpop.f32.mrb[7].mxu0  ;;  %v623_v33 = vpop.f32.mrb[7].mxu1 }
 0x106   : > { %v704_v27 = vadd.f32 %v1378_v9, %v681_v21  ;;  %v679_v29 = vld [vmem:[#allocation2 + $0x40] sm:$0xff]  ;;  %v694_v41 = vadd.f32 %v1378_v9, %v671_v28  ;;  %v674_v45 = vld [vmem:[#allocation2 + $0x18] sm:$0xff]  ;;  %656 = vst.msk [vmem:[#allocation2 + $0x20] sm:$0xff] %vm377_vm0, %v639_v22  ;;  %664 = vst.msk [vmem:[#allocation2 + $0x60] sm:$0xff] %vm377_vm0, %v647_v23  ;;  %v640_v47 = vadd.f32 %v591_v32, %v399_v18  ;;  %v794_v11 = vpop.permute.xlu1 %793 }
 0x107   : > { %v702_v42 = vadd.f32 %v1378_v9, %v679_v29  ;;  %v682_v46 = vld [vmem:[#allocation2 + $0x58] sm:$0xff]  ;;  %v648_v48 = vadd.f32 %v623_v33, %v407_v19  ;;  %v808_v49 = vmul.f32 %v1349_v35, %v696_v26  ;;  %v697_v51 = vadd.f32 %v1378_v9, %v674_v45  ;;  %v672_v53 = vld [vmem:[#allocation2 + $0x8] sm:$0xff]  ;;  %659 = vst.msk [vmem:[#allocation2 + $0x38] sm:$0xff] %vm377_vm0, %v642_v30  ;;  %v799_v19 = vpop.permute.xlu0 %798 }
 0x108   : > { %v816_v50 = vmul.f32 %v779_v6, %v704_v27  ;;  %v705_v52 = vadd.f32 %v1378_v9, %v682_v46  ;;  %v680_v54 = vld [vmem:[#allocation2 + $0x48] sm:$0xff]  ;;  %667 = vst.msk [vmem:[#allocation2 + $0x78] sm:$0xff] %vm377_vm0, %v650_v31  ;;  %v806_v56 = vmul.f32 %v1347_v34, %v694_v41  ;;  %v695_v58 = vadd.f32 %v1378_v9, %v672_v53 }
 0x109   : > { %v814_v57 = vmul.f32 %v1363_v44, %v702_v42  ;;  %v703_v35 = vadd.f32 %v1378_v9, %v680_v54  ;;  %657 = vst.msk [vmem:[#allocation2 + $0x28] sm:$0xff] %vm377_vm0, %v640_v47  ;;  %665 = vst.msk [vmem:[#allocation2 + $0x68] sm:$0xff] %vm377_vm0, %v648_v48  ;;  %vm824_vm1 = vcmp.ge.f32.partialorder %v808_v49, 0.0  ;;  %v840_v34 = vmul.f32 0.1, %v808_v49 }
 0x10a   : > { %vm832_vm2 = vcmp.ge.f32.partialorder %v816_v50, 0.0  ;;  %v848_v44 = vmul.f32 0.1, %v816_v50  ;;  %vm822_vm3 = vcmp.ge.f32.partialorder %v806_v56, 0.0  ;;  %v838_v60 = vmul.f32 0.1, %v806_v56 }
 0x10b   : > { %vm830_vm4 = vcmp.ge.f32.partialorder %v814_v57, 0.0  ;;  %v846_v61 = vmul.f32 0.1, %v814_v57  ;;  %v856_v62 = vsel %vm824_vm1, %v808_v49, %v840_v34  ;;  %v809_v0 = vmul.f32 %v1353_v37, %v697_v51 }
 0x10c   : > { %v864_v63 = vsel %vm832_vm2, %v816_v50, %v848_v44  ;;  %v817_v1 = vmul.f32 %v784_v55, %v705_v52  ;;  %872 = vst.msk [vmem:[%s1404_s25 + $0x10] sm:$0xff] %vm377_vm0, %v856_v62  ;;  %v854_v2 = vsel %vm822_vm3, %v806_v56, %v838_v60  ;;  %v807_v4 = vmul.f32 %v1351_v36, %v695_v58  ;;  %v677_v7 = vld [vmem:[#allocation2 + $0x30] sm:$0xff] }
 0x10d   : > { %880 = vst.msk [vmem:[%s1404_s25 + $0x50] sm:$0xff] %vm377_vm0, %v864_v63  ;;  %v862_v3 = vsel %vm830_vm4, %v814_v57, %v846_v61  ;;  %v815_v6 = vmul.f32 %v1373_v5, %v703_v35  ;;  %v685_v8 = vld [vmem:[#allocation2 + $0x70] sm:$0xff]  ;;  %870 = vst.msk [vmem:[%s1404_s25] sm:$0xff] %vm377_vm0, %v854_v2  ;;  %vm825_vm5 = vcmp.ge.f32.partialorder %v809_v0, 0.0  ;;  %v841_v10 = vmul.f32 0.1, %v809_v0 }
 0x10e   : > { %878 = vst.msk [vmem:[%s1404_s25 + $0x40] sm:$0xff] %vm377_vm0, %v862_v3  ;;  %vm833_vm6 = vcmp.ge.f32.partialorder %v817_v1, 0.0  ;;  %v849_v37 = vmul.f32 0.1, %v817_v1  ;;  %vm823_vm7 = vcmp.ge.f32.partialorder %v807_v4, 0.0  ;;  %v700_v5 = vadd.f32 %v1378_v9, %v677_v7  ;;  %v675_v16 = vld [vmem:[#allocation2 + $0x20] sm:$0xff] }
 0x10f   : > { %v839_v12 = vmul.f32 0.1, %v807_v4  ;;  %vm831_vm8 = vcmp.ge.f32.partialorder %v815_v6, 0.0  ;;  %v847_v13 = vmul.f32 0.1, %v815_v6  ;;  %v857_v36 = vsel %vm825_vm5, %v809_v0, %v841_v10  ;;  %v683_v17 = vld [vmem:[#allocation2 + $0x60] sm:$0xff] }
 0x110   : > { %v865_v14 = vsel %vm833_vm6, %v817_v1, %v849_v37  ;;  %v708_v15 = vadd.f32 %v1378_v9, %v685_v8  ;;  %v678_v18 = vld [vmem:[#allocation2 + $0x38] sm:$0xff]  ;;  %873 = vst.msk [vmem:[%s1404_s25 + $0x18] sm:$0xff] %vm377_vm0, %v857_v36  ;;  %v698_v22 = vadd.f32 %v1378_v9, %v675_v16  ;;  %v706_v23 = vadd.f32 %v1378_v9, %v683_v17  ;;  %v676_v25 = vld [vmem:[#allocation2 + $0x28] sm:$0xff] }
 0x111   : > { %881 = vst.msk [vmem:[%s1404_s25 + $0x58] sm:$0xff] %vm377_vm0, %v865_v14  ;;  %v855_v20 = vsel %vm823_vm7, %v807_v4, %v839_v12  ;;  %v863_v21 = vsel %vm831_vm8, %v815_v6, %v847_v13  ;;  %v686_v24 = vld [vmem:[#allocation2 + $0x78] sm:$0xff]  ;;  %v684_v26 = vld [vmem:[#allocation2 + $0x68] sm:$0xff]  ;;  %v812_v27 = vmul.f32 %v1359_v40, %v700_v5  ;;  %v701_v29 = vadd.f32 %v1378_v9, %v678_v18  ;;  %v804_v40 = vpop.permute.xlu1 %803 }
 0x112   : > { %871 = vst.msk [vmem:[%s1404_s25 + $0x8] sm:$0xff] %vm377_vm0, %v855_v20  ;;  %879 = vst.msk [vmem:[%s1404_s25 + $0x48] sm:$0xff] %vm377_vm0, %v863_v21  ;;  %v820_v28 = vmul.f32 %v799_v19, %v708_v15  ;;  %v709_v30 = vadd.f32 %v1378_v9, %v686_v24  ;;  %v810_v31 = vmul.f32 %v1355_v38, %v698_v22 }
 0x113   : > { %v818_v32 = vmul.f32 %v789_v59, %v706_v23  ;;  %v699_v33 = vadd.f32 %v1378_v9, %v676_v25  ;;  %v707_v41 = vadd.f32 %v1378_v9, %v684_v26  ;;  %vm828_vm9 = vcmp.ge.f32.partialorder %v812_v27, 0.0 }
 0x114   : > { %v844_v42 = vmul.f32 0.1, %v812_v27  ;;  %vm836_vm10 = vcmp.ge.f32.partialorder %v820_v28, 0.0  ;;  %v852_v45 = vmul.f32 0.1, %v820_v28  ;;  %vm826_vm11 = vcmp.ge.f32.partialorder %v810_v31, 0.0 }
 0x115   : > { %v842_v46 = vmul.f32 0.1, %v810_v31  ;;  %vm834_vm12 = vcmp.ge.f32.partialorder %v818_v32, 0.0  ;;  %v850_v47 = vmul.f32 0.1, %v818_v32  ;;  %v813_v49 = vmul.f32 %v1361_v43, %v701_v29 }
 0x116   : > { %v860_v48 = vsel %vm828_vm9, %v812_v27, %v844_v42  ;;  %v868_v38 = vsel %vm836_vm10, %v820_v28, %v852_v45  ;;  %v821_v50 = vmul.f32 %v804_v40, %v709_v30  ;;  %v811_v52 = vmul.f32 %v1357_v39, %v699_v33 }
 0x117   : > { %876 = vst.msk [vmem:[%s1404_s25 + $0x30] sm:$0xff] %vm377_vm0, %v860_v48  ;;  %884 = vst.msk [vmem:[%s1404_s25 + $0x70] sm:$0xff] %vm377_vm0, %v868_v38  ;;  %v858_v9 = vsel %vm826_vm11, %v810_v31, %v842_v46  ;;  %v866_v51 = vsel %vm834_vm12, %v818_v32, %v850_v47  ;;  %v819_v53 = vmul.f32 %v794_v11, %v707_v41  ;;  %vm829_vm13 = vcmp.ge.f32.partialorder %v813_v49, 0.0 }
 0x118   : > { %874 = vst.msk [vmem:[%s1404_s25 + $0x20] sm:$0xff] %vm377_vm0, %v858_v9  ;;  %882 = vst.msk [vmem:[%s1404_s25 + $0x60] sm:$0xff] %vm377_vm0, %v866_v51  ;;  %v845_v43 = vmul.f32 0.1, %v813_v49  ;;  %vm837_vm14 = vcmp.ge.f32.partialorder %v821_v50, 0.0  ;;  %vm827_vm15 = vcmp.ge.f32.partialorder %v811_v52, 0.0 }
 0x119   : > { %v853_v54 = vmul.f32 0.1, %v821_v50  ;;  %v843_v55 = vmul.f32 0.1, %v811_v52  ;;  %vm835_vm1 = vcmp.ge.f32.partialorder %v819_v53, 0.0 }
 0x11a   : > { %v851_v56 = vmul.f32 0.1, %v819_v53  ;;  %v861_v57 = vsel %vm829_vm13, %v813_v49, %v845_v43 }
 0x11b   : > { %v869_v58 = vsel %vm837_vm14, %v821_v50, %v853_v54  ;;  %877 = vst.msk [vmem:[%s1404_s25 + $0x38] sm:$0xff] %vm377_vm0, %v861_v57  ;;  %v859_v39 = vsel %vm827_vm15, %v811_v52, %v843_v55 }
 0x11c   : > { %885 = vst.msk [vmem:[%s1404_s25 + $0x78] sm:$0xff] %vm377_vm0, %v869_v58  ;;  %v867_v35 = vsel %vm835_vm1, %v819_v53, %v851_v56  ;;  %875 = vst.msk [vmem:[%s1404_s25 + $0x28] sm:$0xff] %vm377_vm0, %v859_v39 }
 0x11d   : > { %883 = vst.msk [vmem:[%s1404_s25 + $0x68] sm:$0xff] %vm377_vm0, %v867_v35 }
 0x11e PF: > { %s14_s17 = sadd.s32 1, %s1220_s17   ;;  %s1467_s15 = smov %s1216_s16 }
 0x11f   : > { %p11_p5 = scmp.ge.s32.totalorder %s14_s17, 4   ;;  %s1468_s16 = smov %s1470_s18 }
 0x121   :  { %13 = sbr.rel (!%p11_p5) target bundleno = 2 (0x2), region = 83 }

// kernel: forward.8
= control target key start
LH: loop header
LB: loop body
LE: loop exit
PB: predicated region body
PF: predicated region fallthrough
CT: control target
= control target key end

     0   :  { %s1152_s15 = smov 0   ;;  %s1154_s16 = smov 0   ;;  %s1304_s0 = inlined_call_operand.vmem [shape: bf16[2,1,64,256], index: 0, kind: input, shape index: {}]   ;;  %s1305_s1 = inlined_call_operand.vmem [shape: bf16[1,256,8], index: 1, kind: input, shape index: {}]   ;;  %s1306_s2 = inlined_call_operand.vmem [shape: f32[1,1,8], index: 2, kind: input, shape index: {}]   ;;  %s1307_s3 = inlined_call_operand.vmem [shape: f32[2,64,1], index: 3, kind: input, shape index: {}]   ;;  %s1308_s4 = inlined_call_operand.vmem [shape: f32[2,1,64,8], index: 4, kind: output, shape index: {}]  }
   0x1   :  { %s1156_s17 = smov 0  }
   0x2 LB: > { %s40_s18 = sadd.s32 1, %s1119_s16  ;;  %p952_p0 = scmp.ge.s32.totalorder %s1123_s17, 1  ;;  %s1123_s17 = sphi %s1156_s17, %s14_s17   ;;  %s1119_s16 = sphi %s1154_s16, %s1310_s16   ;;  %s1115_s15 = sphi %s1152_s15, %s1309_s15  }
   0x3   : > { %p42_p1 = scmp.ge.s32.totalorder %s40_s18, 2  ;;  %p255_p2 = scmp.lt.s32.totalorder %s1123_s17, 3 }
   0x5   : > { %s1312_s18 = smov (%p42_p1, %s40_s18), 0  ;;  %p256_p3 = pnand %p952_p0, %p255_p2 }
   0x6   : > { %v1073_v0 = vld [vmem:[%s1305_s1 + $0x40] sm:$0xff] (!%p256_p3)   ;;  %v1075_v2 = vld [vmem:[%s1305_s1 + $0x48] sm:$0xff] (!%p256_p3)   ;;  %p325_p4 = scmp.lt.s32.totalorder (!%p256_p3), %s1115_s15, 1  ;;  %v1077_v4 = vld [vmem:[%s1305_s1 + $0x50] sm:$0xff] (!%p256_p3)   ;;  %v1125_v5 = vmov (!%p256_p3), 0   ;;  %vm385_vm0 = vcmask (!%p256_p3), 64512  }
   0x7   : > { %259 = sbr.rel (%p256_p3) target bundleno = 283 (0x11b), region = 36  ;;  %v1074_v1 = vld [vmem:[%s1305_s1] sm:$0xff] (!%p256_p3)   ;;  %989 = vmatprep.subr.bf16.mxu0 (!%p256_p3), %v1073_v0  ;;  %1029 = vmatprep.subr.bf16.mxu1 (!%p256_p3), %v1073_v0  ;;  %v1076_v3 = vld [vmem:[%s1305_s1 + $0x8] sm:$0xff] (!%p256_p3)   ;;  %v1078_v6 = vld [vmem:[%s1305_s1 + $0x10] sm:$0xff] (!%p256_p3)   ;;  %v1126_v33 = vmov (!%p256_p3), 0.0  }
   0x8   : > { %990 = vmatpush3.bf16.msra.mxu0 (!%p256_p3), %v1074_v1  ;;  %1037 = vmatpush3.bf16.msra.mxu1 (!%p256_p3), %v1074_v1  ;;  %v1079_v7 = vld [vmem:[%s1305_s1 + $0x58] sm:$0xff] (!%p256_p3)   ;;  %v1081_v9 = vld [vmem:[%s1305_s1 + $0x60] sm:$0xff] (!%p256_p3)   ;;  %v1083_v11 = vld [vmem:[%s1305_s1 + $0x68] sm:$0xff] (!%p256_p3)   ;;  %386 = vst.msk [vmem:[#allocation2] sm:$0xff] (!%p256_p3), %vm385_vm0, %v1126_v33 }
   0x9   : > { %991 = vmatprep.subr.bf16.mxu0 (!%p256_p3), %v1075_v2  ;;  %1030 = vmatprep.subr.bf16.mxu1 (!%p256_p3), %v1075_v2  ;;  %v1080_v8 = vld [vmem:[%s1305_s1 + $0x18] sm:$0xff] (!%p256_p3)   ;;  %v1082_v10 = vld [vmem:[%s1305_s1 + $0x20] sm:$0xff] (!%p256_p3)   ;;  %v1084_v14 = vld [vmem:[%s1305_s1 + $0x28] sm:$0xff] (!%p256_p3)   ;;  %387 = vst.msk [vmem:[#allocation2 + $0x8] sm:$0xff] (!%p256_p3), %vm385_vm0, %v1126_v33 }
   0xa   : > { %1072 = vset.pattern.permute.xlu1 (!%p256_p3), %v1125_v5  ;;  %1071 = vset.pattern.permute.xlu0 (!%p256_p3), %v1125_v5  ;;  %v1085_v15 = vld [vmem:[%s1305_s1 + $0x70] sm:$0xff] (!%p256_p3)   ;;  %v1087_v21 = vld [vmem:[%s1305_s1 + $0x78] sm:$0xff] (!%p256_p3)   ;;  %388 = vst.msk [vmem:[#allocation2 + $0x10] sm:$0xff] (!%p256_p3), %vm385_vm0, %v1126_v33  ;;  %389 = vst.msk [vmem:[#allocation2 + $0x18] sm:$0xff] (!%p256_p3), %vm385_vm0, %v1126_v33 }
   0xb   : > { %v1086_v18 = vld [vmem:[%s1305_s1 + $0x30] sm:$0xff] (!%p256_p3)   ;;  %v1088_v22 = vld [vmem:[%s1305_s1 + $0x38] sm:$0xff] (!%p256_p3)   ;;  %390 = vst.msk [vmem:[#allocation2 + $0x20] sm:$0xff] (!%p256_p3), %vm385_vm0, %v1126_v33  ;;  %391 = vst.msk [vmem:[#allocation2 + $0x28] sm:$0xff] (!%p256_p3), %vm385_vm0, %v1126_v33 }
   0xc   : > { %992 = vmatpush3.bf16.msra.mxu0 (!%p256_p3), %v1076_v3  ;;  %1038 = vmatpush3.bf16.msra.mxu1 (!%p256_p3), %v1076_v3  ;;  %392 = vst.msk [vmem:[#allocation2 + $0x30] sm:$0xff] (!%p256_p3), %vm385_vm0, %v1126_v33  ;;  %393 = vst.msk [vmem:[#allocation2 + $0x38] sm:$0xff] (!%p256_p3), %vm385_vm0, %v1126_v33 }
   0xd   : > { %993 = vmatprep.subr.bf16.mxu0 (!%p256_p3), %v1077_v4  ;;  %1031 = vmatprep.subr.bf16.mxu1 (!%p256_p3), %v1077_v4  ;;  %v983_v4 = vld [vmem:[%s1306_s2] ss:$0 sm:$0xff] (!%p256_p3) }
   0xe   : > { %s1314_s15 = smov (!%p325_p4, %s1115_s15), 1 }
   0xf   : > { %s1194_s9 = sshll.u32 %s1314_s15, 6  ;;  %v394_v38 = vld [vmem:[#allocation2] sm:$0xff] }
  0x10   : > { %994 = vmatpush3.bf16.msra.mxu0 %v1078_v6  ;;  %1039 = vmatpush3.bf16.msra.mxu1 %v1078_v6  ;;  %s1203_s14 = scalar_lea.vmem %s1304_s0, %s1194_s9  ;;  %s1217_s24 = scalar_lea.vmem %s1307_s3, %s1194_s9  ;;  %v395_v46 = vld [vmem:[#allocation2 + $0x8] sm:$0xff] }
  0x11   : > { %995 = vmatprep.subr.bf16.mxu0 %v1079_v7  ;;  %1032 = vmatprep.subr.bf16.mxu1 %v1079_v7  ;;  %v1091_v12 = vld [vmem:[%s1203_s14 + $0x4] ss:$8 sps:$4 sm:$0xff]   ;;  %v688_v16 = vld [vmem:[%s1217_s24 + $0x10] sm:$0xff]  ;;  %v689_v19 = vld [vmem:[%s1217_s24 + $0x18] sm:$0xff] }
  0x12   : > { %v1094_v13 = vld [vmem:[%s1203_s14 + $0x24] ss:$8 sps:$4 sm:$0xff]   ;;  %610 = vmatprep.mubr.bf16.mxu0 %v1091_v12  ;;  %706 = vperm.xlu1 %1072, %v688_v16   ;;  %v1089_v25 = vld [vmem:[%s1203_s14] ss:$8 sps:$4 sm:$0xff]   ;;  %v1095_v27 = vld [vmem:[%s1203_s14 + $0x14] ss:$8 sps:$4 sm:$0xff]  }
  0x13   : > { %626 = vmatprep.mubr.bf16.mxu1 %v1094_v13  ;;  %v686_v17 = vld [vmem:[%s1217_s24] sm:$0xff]  ;;  %v687_v20 = vld [vmem:[%s1217_s24 + $0x8] sm:$0xff]  ;;  %v1097_v28 = vld [vmem:[%s1203_s14 + $0x34] ss:$8 sps:$4 sm:$0xff]  }
  0x14   : > { %996 = vmatpush3.bf16.msra.mxu0 %v1080_v8  ;;  %1040 = vmatpush3.bf16.msra.mxu1 %v1080_v8  ;;  %v691_v23 = vld [vmem:[%s1217_s24 + $0x28] sm:$0xff]  ;;  %v690_v24 = vld [vmem:[%s1217_s24 + $0x20] sm:$0xff]  ;;  %v693_v29 = vld [vmem:[%s1217_s24 + $0x38] sm:$0xff] }
  0x15   : > { %997 = vmatprep.subr.bf16.mxu0 %v1081_v9  ;;  %1033 = vmatprep.subr.bf16.mxu1 %v1081_v9  ;;  %v1092_v26 = vld [vmem:[%s1203_s14 + $0x20] ss:$8 sps:$4 sm:$0xff]   ;;  %v692_v30 = vld [vmem:[%s1217_s24 + $0x30] sm:$0xff]  ;;  %v397_v5 = vld [vmem:[#allocation2 + $0x18] sm:$0xff] }
  0x16   : > { %696 = vperm.xlu0 %1071, %v686_v17   ;;  %711 = vperm.xlu1 %1072, %v689_v19   ;;  %v1099_v31 = vld [vmem:[%s1203_s14 + $0x10] ss:$8 sps:$4 sm:$0xff]   ;;  %v398_v40 = vld [vmem:[#allocation2 + $0x20] sm:$0xff]  ;;  %v399_v48 = vld [vmem:[#allocation2 + $0x28] sm:$0xff] }
  0x17   : > { %v1100_v32 = vld [vmem:[%s1203_s14 + $0x30] ss:$8 sps:$4 sm:$0xff]   ;;  %s1275_s14 = scalar_lea.vmem %s1308_s4, %s1194_s9 }
  0x18   : > { %998 = vmatpush3.bf16.msra.mxu0 %v1082_v10  ;;  %1041 = vmatpush3.bf16.msra.mxu1 %v1082_v10  ;;  %v396_v60 = vld [vmem:[#allocation2 + $0x10] sm:$0xff]  ;;  %v401_v7 = vld [vmem:[#allocation2 + $0x38] sm:$0xff] }
  0x19   : > { %999 = vmatprep.subr.bf16.mxu0 %v1083_v11  ;;  %1034 = vmatprep.subr.bf16.mxu1 %v1083_v11  ;;  %v400_v62 = vld [vmem:[#allocation2 + $0x30] sm:$0xff] }
  0x1a   : > { %701 = vperm.xlu0 %1071, %v687_v20   ;;  %721 = vperm.xlu1 %1072, %v691_v23  }
  0x1c   : > { %1000 = vmatpush3.bf16.msra.mxu0 %v1084_v14  ;;  %1042 = vmatpush3.bf16.msra.mxu1 %v1084_v14 }
  0x1d   : > { %1001 = vmatprep.subr.bf16.mxu0 %v1085_v15  ;;  %1035 = vmatprep.subr.bf16.mxu1 %v1085_v15 }
  0x1e   : > { %716 = vperm.xlu0 %1071, %v690_v24   ;;  %731 = vperm.xlu1 %1072, %v693_v29  }
  0x20   : > { %1002 = vmatpush3.bf16.msra.mxu0 %v1086_v18  ;;  %1043 = vmatpush3.bf16.msra.mxu1 %v1086_v18 }
  0x21   : > { %1003 = vmatprep.subr.bf16.mxu0 %v1087_v21  ;;  %1036 = vmatprep.subr.bf16.mxu1 %v1087_v21 }
  0x22   : > { %726 = vperm.xlu0 %1071, %v692_v30  }
  0x24   : > { %1004 = vmatpush3.bf16.msra.mxu0 %v1088_v22  ;;  %1044 = vmatpush3.bf16.msra.mxu1 %v1088_v22 }
  0x27   : > { %611 = vmatmul.mubr.bf16.vlgmr.msra.gmra.mrb[0].mxu0 %v1089_v25  ;;  %627 = vmatmul.mubr.bf16.vlgmr.msra.gmra.mrb[0].mxu1 %v1092_v26 }
  0x28   : > { %618 = vmatprep.mubr.bf16.mxu0 %v1095_v27  ;;  %634 = vmatprep.mubr.bf16.mxu1 %v1097_v28 }
  0x2f   : > { %619 = vmatmul.mubr.bf16.gmra.mrb[4].mxu0 %v1099_v31  ;;  %635 = vmatmul.mubr.bf16.gmra.mrb[4].mxu1 %v1100_v32 }
  0x91   : > { %v1256_v34 = vpop.permute.xlu1 %706 }
  0x95   : > { %v697_v35 = vpop.permute.xlu0 %696  ;;  %v1260_v56 = vpop.permute.xlu1 %711 }
  0x99   : > { %v702_v57 = vpop.permute.xlu0 %701  ;;  %v722_v26 = vpop.permute.xlu1 %721 }
  0x9d   : > { %v717_v21 = vpop.permute.xlu0 %716 }
  0xfa   : > { %v1005_v36 = vpop.f32.mrb[0].mxu0  ;;  %v1017_v37 = vpop.f32.mrb[0].mxu1 }
  0xfb   : > { %v1006_v39 = vpop.f32.mrb[1].mxu0  ;;  %v1018_v41 = vpop.f32.mrb[1].mxu1 }
  0xfc   : > { %v1007_v42 = vadd.f32 %v1006_v39, %v1005_v36  ;;  %v1019_v43 = vadd.f32 %v1018_v41, %v1017_v37  ;;  %v1008_v44 = vpop.f32.mrb[2].mxu0  ;;  %v1020_v45 = vpop.f32.mrb[2].mxu1 }
  0xfd   : > { %v1009_v47 = vpop.f32.mrb[3].mxu0  ;;  %v1021_v49 = vpop.f32.mrb[3].mxu1 }
  0xfe   : > { %v643_v50 = vadd.f32 %v1007_v42, %v394_v38  ;;  %v647_v51 = vadd.f32 %v1019_v43, %v398_v40  ;;  %v1010_v52 = vadd.f32 %v1009_v47, %v1008_v44  ;;  %v1022_v53 = vadd.f32 %v1021_v49, %v1020_v45  ;;  %v727_v44 = vpop.permute.xlu0 %726  ;;  %v732_v49 = vpop.permute.xlu1 %731 }
 0x100   : > { %652 = vst.msk [vmem:[#allocation2] sm:$0xff] %vm385_vm0, %v643_v50  ;;  %656 = vst.msk [vmem:[#allocation2 + $0x20] sm:$0xff] %vm385_vm0, %v647_v51  ;;  %v644_v54 = vadd.f32 %v1010_v52, %v395_v46  ;;  %v648_v55 = vadd.f32 %v1022_v53, %v399_v48 }
 0x102   : > { %653 = vst.msk [vmem:[#allocation2 + $0x8] sm:$0xff] %vm385_vm0, %v644_v54  ;;  %657 = vst.msk [vmem:[#allocation2 + $0x28] sm:$0xff] %vm385_vm0, %v648_v55  ;;  %v1011_v58 = vpop.f32.mrb[4].mxu0  ;;  %v1023_v59 = vpop.f32.mrb[4].mxu1 }
 0x103   : > { %v1012_v61 = vpop.f32.mrb[5].mxu0  ;;  %v1024_v63 = vpop.f32.mrb[5].mxu1 }
 0x104   : > { %v1013_v0 = vadd.f32 %v1012_v61, %v1011_v58  ;;  %v1025_v1 = vadd.f32 %v1024_v63, %v1023_v59  ;;  %v1014_v2 = vpop.f32.mrb[6].mxu0  ;;  %v1026_v3 = vpop.f32.mrb[6].mxu1 }
 0x105   : > { %v1015_v6 = vpop.f32.mrb[7].mxu0  ;;  %v1027_v8 = vpop.f32.mrb[7].mxu1 }
 0x106   : > { %v645_v9 = vadd.f32 %v1013_v0, %v396_v60  ;;  %v649_v10 = vadd.f32 %v1025_v1, %v400_v62  ;;  %v1016_v11 = vadd.f32 %v1015_v6, %v1014_v2  ;;  %v1028_v12 = vadd.f32 %v1027_v8, %v1026_v3 }
 0x107   : > { %v663_v13 = vld [vmem:[#allocation2] sm:$0xff] }
 0x108   : > { %v667_v14 = vld [vmem:[#allocation2 + $0x20] sm:$0xff]  ;;  %v678_v15 = vadd.f32 %v983_v4, %v663_v13  ;;  %654 = vst.msk [vmem:[#allocation2 + $0x10] sm:$0xff] %vm385_vm0, %v645_v9  ;;  %658 = vst.msk [vmem:[#allocation2 + $0x30] sm:$0xff] %vm385_vm0, %v649_v10  ;;  %v646_v17 = vadd.f32 %v1016_v11, %v397_v5  ;;  %v650_v18 = vadd.f32 %v1028_v12, %v401_v7 }
 0x109   : > { %v682_v16 = vadd.f32 %v983_v4, %v667_v14  ;;  %v664_v19 = vld [vmem:[#allocation2 + $0x8] sm:$0xff] }
 0x10a   : > { %v668_v20 = vld [vmem:[#allocation2 + $0x28] sm:$0xff]  ;;  %v679_v22 = vadd.f32 %v983_v4, %v664_v19  ;;  %v734_v23 = vmul.f32 %v697_v35, %v678_v15  ;;  %655 = vst.msk [vmem:[#allocation2 + $0x18] sm:$0xff] %vm385_vm0, %v646_v17  ;;  %659 = vst.msk [vmem:[#allocation2 + $0x38] sm:$0xff] %vm385_vm0, %v650_v18 }
 0x10b   : > { %v683_v24 = vadd.f32 %v983_v4, %v668_v20  ;;  %v738_v25 = vmul.f32 %v717_v21, %v682_v16 }
 0x10c   : > { %v735_v27 = vmul.f32 %v702_v57, %v679_v22  ;;  %vm742_vm1 = vcmp.ge.f32.partialorder %v734_v23, 0.0  ;;  %v750_v28 = vmul.f32 0.1, %v734_v23 }
 0x10d   : > { %v739_v29 = vmul.f32 %v722_v26, %v683_v24  ;;  %vm746_vm2 = vcmp.ge.f32.partialorder %v738_v25, 0.0  ;;  %v754_v30 = vmul.f32 0.1, %v738_v25 }
 0x10e   : > { %vm743_vm3 = vcmp.ge.f32.partialorder %v735_v27, 0.0  ;;  %v751_v31 = vmul.f32 0.1, %v735_v27  ;;  %v758_v32 = vsel %vm742_vm1, %v734_v23, %v750_v28 }
 0x10f   : > { %vm747_vm4 = vcmp.ge.f32.partialorder %v739_v29, 0.0  ;;  %766 = vst.msk [vmem:[%s1275_s14] sm:$0xff] %vm385_vm0, %v758_v32  ;;  %v755_v33 = vmul.f32 0.1, %v739_v29  ;;  %v762_v35 = vsel %vm746_vm2, %v738_v25, %v754_v30  ;;  %v665_v36 = vld [vmem:[#allocation2 + $0x10] sm:$0xff] }
 0x110   : > { %v669_v37 = vld [vmem:[#allocation2 + $0x30] sm:$0xff]  ;;  %v759_v38 = vsel %vm743_vm3, %v735_v27, %v751_v31  ;;  %770 = vst.msk [vmem:[%s1275_s14 + $0x20] sm:$0xff] %vm385_vm0, %v762_v35  ;;  %v680_v39 = vadd.f32 %v983_v4, %v665_v36 }
 0x111   : > { %v684_v40 = vadd.f32 %v983_v4, %v669_v37  ;;  %767 = vst.msk [vmem:[%s1275_s14 + $0x8] sm:$0xff] %vm385_vm0, %v759_v38  ;;  %v763_v41 = vsel %vm747_vm4, %v739_v29, %v755_v33  ;;  %v666_v42 = vld [vmem:[#allocation2 + $0x18] sm:$0xff] }
 0x112   : > { %v670_v43 = vld [vmem:[#allocation2 + $0x38] sm:$0xff]  ;;  %771 = vst.msk [vmem:[%s1275_s14 + $0x28] sm:$0xff] %vm385_vm0, %v763_v41  ;;  %v736_v45 = vmul.f32 %v1256_v34, %v680_v39  ;;  %v681_v46 = vadd.f32 %v983_v4, %v666_v42 }
 0x113   : > { %v685_v47 = vadd.f32 %v983_v4, %v670_v43  ;;  %v740_v48 = vmul.f32 %v727_v44, %v684_v40 }
 0x114   : > { %vm744_vm5 = vcmp.ge.f32.partialorder %v736_v45, 0.0  ;;  %v752_v50 = vmul.f32 0.1, %v736_v45  ;;  %v737_v51 = vmul.f32 %v1260_v56, %v681_v46 }
 0x115   : > { %v741_v52 = vmul.f32 %v732_v49, %v685_v47  ;;  %vm748_vm6 = vcmp.ge.f32.partialorder %v740_v48, 0.0  ;;  %v756_v53 = vmul.f32 0.1, %v740_v48 }
 0x116   : > { %v760_v54 = vsel %vm744_vm5, %v736_v45, %v752_v50  ;;  %vm745_vm7 = vcmp.ge.f32.partialorder %v737_v51, 0.0  ;;  %v753_v55 = vmul.f32 0.1, %v737_v51 }
 0x117   : > { %vm749_vm8 = vcmp.ge.f32.partialorder %v741_v52, 0.0  ;;  %768 = vst.msk [vmem:[%s1275_s14 + $0x10] sm:$0xff] %vm385_vm0, %v760_v54  ;;  %v757_v34 = vmul.f32 0.1, %v741_v52  ;;  %v764_v57 = vsel %vm748_vm6, %v740_v48, %v756_v53 }
 0x118   : > { %v761_v58 = vsel %vm745_vm7, %v737_v51, %v753_v55  ;;  %772 = vst.msk [vmem:[%s1275_s14 + $0x30] sm:$0xff] %vm385_vm0, %v764_v57 }
 0x119   : > { %769 = vst.msk [vmem:[%s1275_s14 + $0x18] sm:$0xff] %vm385_vm0, %v761_v58  ;;  %v765_v59 = vsel %vm749_vm8, %v741_v52, %v757_v34 }
 0x11a   : > { %773 = vst.msk [vmem:[%s1275_s14 + $0x38] sm:$0xff] %vm385_vm0, %v765_v59 }
 0x11b PF: > { %s14_s17 = sadd.s32 1, %s1123_s17   ;;  %s1309_s15 = smov %s1119_s16 }
 0x11c   : > { %p11_p5 = scmp.ge.s32.totalorder %s14_s17, 4   ;;  %s1310_s16 = smov %s1312_s18 }
 0x11e   :  { %13 = sbr.rel (!%p11_p5) target bundleno = 2 (0x2), region = 83 }

// kernel: forward.9
= control target key start
LH: loop header
LB: loop body
LE: loop exit
PB: predicated region body
PF: predicated region fallthrough
CT: control target
= control target key end

     0   :  { %s1022_s15 = smov 0   ;;  %s1024_s16 = smov 0   ;;  %s1132_s0 = inlined_call_operand.vmem [shape: bf16[2,1,32,256], index: 0, kind: input, shape index: {}]   ;;  %s1133_s1 = inlined_call_operand.vmem [shape: bf16[1,256,8], index: 1, kind: input, shape index: {}]   ;;  %s1134_s2 = inlined_call_operand.vmem [shape: f32[1,1,8], index: 2, kind: input, shape index: {}]   ;;  %s1135_s3 = inlined_call_operand.vmem [shape: f32[2,32,1], index: 3, kind: input, shape index: {}]   ;;  %s1136_s4 = inlined_call_operand.vmem [shape: f32[2,1,32,8], index: 4, kind: output, shape index: {}]  }
   0x1   :  { %s1026_s17 = smov 0  }
   0x2 LB: > { %s40_s18 = sadd.s32 1, %s989_s16  ;;  %p844_p0 = scmp.ge.s32.totalorder %s993_s17, 1  ;;  %s993_s17 = sphi %s1026_s17, %s14_s17   ;;  %s989_s16 = sphi %s1024_s16, %s1138_s16   ;;  %s985_s15 = sphi %s1022_s15, %s1137_s15  }
   0x3   : > { %p42_p1 = scmp.ge.s32.totalorder %s40_s18, 2  ;;  %p255_p2 = scmp.lt.s32.totalorder %s993_s17, 3 }
   0x5   : > { %s1140_s18 = smov (%p42_p1, %s40_s18), 0  ;;  %p256_p3 = pnand %p844_p0, %p255_p2 }
   0x6   : > { %v949_v0 = vld [vmem:[%s1133_s1 + $0x40] sm:$0xff] (!%p256_p3)   ;;  %v951_v2 = vld [vmem:[%s1133_s1 + $0x48] sm:$0xff] (!%p256_p3)   ;;  %p325_p4 = scmp.lt.s32.totalorder (!%p256_p3), %s985_s15, 1  ;;  %v953_v4 = vld [vmem:[%s1133_s1 + $0x50] sm:$0xff] (!%p256_p3)   ;;  %v995_v5 = vmov (!%p256_p3), 0   ;;  %vm385_vm0 = vcmask (!%p256_p3), 64512  }
   0x7   : > { %259 = sbr.rel (%p256_p3) target bundleno = 276 (0x114), region = 36  ;;  %v950_v1 = vld [vmem:[%s1133_s1] sm:$0xff] (!%p256_p3)   ;;  %877 = vmatprep.subr.bf16.mxu0 (!%p256_p3), %v949_v0  ;;  %905 = vmatprep.subr.bf16.mxu1 (!%p256_p3), %v949_v0  ;;  %v952_v3 = vld [vmem:[%s1133_s1 + $0x8] sm:$0xff] (!%p256_p3)   ;;  %v954_v6 = vld [vmem:[%s1133_s1 + $0x10] sm:$0xff] (!%p256_p3)   ;;  %v996_v25 = vmov (!%p256_p3), 0.0  }
   0x8   : > { %878 = vmatpush3.bf16.msra.mxu0 (!%p256_p3), %v950_v1  ;;  %913 = vmatpush3.bf16.msra.mxu1 (!%p256_p3), %v950_v1  ;;  %v955_v7 = vld [vmem:[%s1133_s1 + $0x58] sm:$0xff] (!%p256_p3)   ;;  %v957_v9 = vld [vmem:[%s1133_s1 + $0x60] sm:$0xff] (!%p256_p3)   ;;  %v959_v11 = vld [vmem:[%s1133_s1 + $0x68] sm:$0xff] (!%p256_p3)   ;;  %386 = vst.msk [vmem:[#allocation2] sm:$0xff] (!%p256_p3), %vm385_vm0, %v996_v25 }
   0x9   : > { %879 = vmatprep.subr.bf16.mxu0 (!%p256_p3), %v951_v2  ;;  %906 = vmatprep.subr.bf16.mxu1 (!%p256_p3), %v951_v2  ;;  %v956_v8 = vld [vmem:[%s1133_s1 + $0x18] sm:$0xff] (!%p256_p3)   ;;  %v958_v10 = vld [vmem:[%s1133_s1 + $0x20] sm:$0xff] (!%p256_p3)   ;;  %v960_v14 = vld [vmem:[%s1133_s1 + $0x28] sm:$0xff] (!%p256_p3)   ;;  %387 = vst.msk [vmem:[#allocation2 + $0x8] sm:$0xff] (!%p256_p3), %vm385_vm0, %v996_v25 }
   0xa   : > { %948 = vset.pattern.permute.xlu1 (!%p256_p3), %v995_v5  ;;  %947 = vset.pattern.permute.xlu0 (!%p256_p3), %v995_v5  ;;  %v961_v17 = vld [vmem:[%s1133_s1 + $0x70] sm:$0xff] (!%p256_p3)   ;;  %v963_v21 = vld [vmem:[%s1133_s1 + $0x78] sm:$0xff] (!%p256_p3)   ;;  %388 = vst.msk [vmem:[#allocation2 + $0x10] sm:$0xff] (!%p256_p3), %vm385_vm0, %v996_v25  ;;  %389 = vst.msk [vmem:[#allocation2 + $0x18] sm:$0xff] (!%p256_p3), %vm385_vm0, %v996_v25 }
   0xb   : > { %v962_v18 = vld [vmem:[%s1133_s1 + $0x30] sm:$0xff] (!%p256_p3)   ;;  %v964_v22 = vld [vmem:[%s1133_s1 + $0x38] sm:$0xff] (!%p256_p3)   ;;  %v871_v46 = vld [vmem:[%s1134_s2] ss:$0 sm:$0xff] (!%p256_p3) }
   0xc   : > { %880 = vmatpush3.bf16.msra.mxu0 (!%p256_p3), %v952_v3  ;;  %914 = vmatpush3.bf16.msra.mxu1 (!%p256_p3), %v952_v3 }
   0xd   : > { %881 = vmatprep.subr.bf16.mxu0 (!%p256_p3), %v953_v4  ;;  %907 = vmatprep.subr.bf16.mxu1 (!%p256_p3), %v953_v4 }
   0xe   : > { %s1142_s15 = smov (!%p325_p4, %s985_s15), 1 }
   0xf   : > { %s1064_s9 = sshll.u32 %s1142_s15, 5  ;;  %v390_v28 = vld [vmem:[#allocation2] sm:$0xff] }
  0x10   : > { %882 = vmatpush3.bf16.msra.mxu0 %v954_v6  ;;  %915 = vmatpush3.bf16.msra.mxu1 %v954_v6  ;;  %s1073_s14 = scalar_lea.vmem %s1132_s0, %s1064_s9  ;;  %s364_s24 = scalar_lea.vmem %s1135_s3, %s1064_s9  ;;  %v391_v36 = vld [vmem:[#allocation2 + $0x8] sm:$0xff] }
  0x11   : > { %883 = vmatprep.subr.bf16.mxu0 %v955_v7  ;;  %908 = vmatprep.subr.bf16.mxu1 %v955_v7  ;;  %v967_v12 = vld [vmem:[%s1073_s14 + $0x4] ss:$8 sps:$4 sm:$0xff]   ;;  %v970_v13 = vld [vmem:[%s1073_s14 + $0x14] ss:$8 sps:$4 sm:$0xff]   ;;  %v965_v23 = vld [vmem:[%s1073_s14] ss:$8 sps:$4 sm:$0xff]  }
  0x12   : > { %v624_v15 = vld [vmem:[%s364_s24 + $0x10] sm:$0xff]  ;;  %v622_v16 = vld [vmem:[%s364_s24] sm:$0xff]  ;;  %578 = vmatprep.mubr.bf16.mxu0 %v967_v12  ;;  %586 = vmatprep.mubr.bf16.mxu1 %v970_v13  ;;  %v625_v19 = vld [vmem:[%s364_s24 + $0x18] sm:$0xff] }
  0x13   : > { %638 = vperm.xlu1 %948, %v624_v15   ;;  %628 = vperm.xlu0 %947, %v622_v16   ;;  %v623_v20 = vld [vmem:[%s364_s24 + $0x8] sm:$0xff]  ;;  %v968_v24 = vld [vmem:[%s1073_s14 + $0x10] ss:$8 sps:$4 sm:$0xff]   ;;  %s378_s14 = scalar_lea.vmem %s1136_s4, %s1064_s9 }
  0x14   : > { %884 = vmatpush3.bf16.msra.mxu0 %v956_v8  ;;  %916 = vmatpush3.bf16.msra.mxu1 %v956_v8  ;;  %v392_v30 = vld [vmem:[#allocation2 + $0x10] sm:$0xff]  ;;  %v393_v38 = vld [vmem:[#allocation2 + $0x18] sm:$0xff] }
  0x15   : > { %885 = vmatprep.subr.bf16.mxu0 %v957_v9  ;;  %909 = vmatprep.subr.bf16.mxu1 %v957_v9 }
  0x17   : > { %643 = vperm.xlu1 %948, %v625_v19   ;;  %633 = vperm.xlu0 %947, %v623_v20  }
  0x18   : > { %886 = vmatpush3.bf16.msra.mxu0 %v958_v10  ;;  %917 = vmatpush3.bf16.msra.mxu1 %v958_v10 }
  0x19   : > { %887 = vmatprep.subr.bf16.mxu0 %v959_v11  ;;  %910 = vmatprep.subr.bf16.mxu1 %v959_v11 }
  0x1c   : > { %888 = vmatpush3.bf16.msra.mxu0 %v960_v14  ;;  %918 = vmatpush3.bf16.msra.mxu1 %v960_v14 }
  0x1d   : > { %889 = vmatprep.subr.bf16.mxu0 %v961_v17  ;;  %911 = vmatprep.subr.bf16.mxu1 %v961_v17 }
  0x20   : > { %890 = vmatpush3.bf16.msra.mxu0 %v962_v18  ;;  %919 = vmatpush3.bf16.msra.mxu1 %v962_v18 }
  0x21   : > { %891 = vmatprep.subr.bf16.mxu0 %v963_v21  ;;  %912 = vmatprep.subr.bf16.mxu1 %v963_v21 }
  0x24   : > { %892 = vmatpush3.bf16.msra.mxu0 %v964_v22  ;;  %920 = vmatpush3.bf16.msra.mxu1 %v964_v22 }
  0x27   : > { %579 = vmatmul.mubr.bf16.vlgmr.msra.gmra.mrb[0].mxu0 %v965_v23  ;;  %587 = vmatmul.mubr.bf16.vlgmr.msra.gmra.mrb[0].mxu1 %v968_v24 }
  0x92   : > { %v639_v47 = vpop.permute.xlu1 %638  ;;  %v629_v48 = vpop.permute.xlu0 %628 }
  0x96   : > { %v644_v61 = vpop.permute.xlu1 %643  ;;  %v634_v62 = vpop.permute.xlu0 %633 }
  0xfa   : > { %v893_v26 = vpop.f32.mrb[0].mxu0  ;;  %v899_v27 = vpop.f32.mrb[0].mxu1 }
  0xfb   : > { %v894_v29 = vpop.f32.mrb[1].mxu0  ;;  %v900_v31 = vpop.f32.mrb[1].mxu1 }
  0xfc   : > { %v895_v32 = vadd.f32 %v894_v29, %v893_v26  ;;  %v901_v33 = vadd.f32 %v900_v31, %v899_v27  ;;  %v896_v34 = vpop.f32.mrb[2].mxu0  ;;  %v902_v35 = vpop.f32.mrb[2].mxu1 }
  0xfd   : > { %v897_v37 = vpop.f32.mrb[3].mxu0  ;;  %v903_v39 = vpop.f32.mrb[3].mxu1 }
  0xfe   : > { %v595_v40 = vadd.f32 %v895_v32, %v390_v28  ;;  %v597_v41 = vadd.f32 %v901_v33, %v392_v30  ;;  %v898_v42 = vadd.f32 %v897_v37, %v896_v34  ;;  %v904_v43 = vadd.f32 %v903_v39, %v902_v35 }
 0x100   : > { %600 = vst.msk [vmem:[#allocation2] sm:$0xff] %vm385_vm0, %v595_v40  ;;  %602 = vst.msk [vmem:[#allocation2 + $0x10] sm:$0xff] %vm385_vm0, %v597_v41  ;;  %v596_v44 = vadd.f32 %v898_v42, %v391_v36  ;;  %v598_v45 = vadd.f32 %v904_v43, %v393_v38 }
 0x102   : > { %601 = vst.msk [vmem:[#allocation2 + $0x8] sm:$0xff] %vm385_vm0, %v596_v44  ;;  %603 = vst.msk [vmem:[#allocation2 + $0x18] sm:$0xff] %vm385_vm0, %v598_v45 }
 0x107   : > { %v609_v49 = vld [vmem:[#allocation2 + $0x10] sm:$0xff]  ;;  %v607_v50 = vld [vmem:[#allocation2] sm:$0xff] }
 0x108   : > { %v620_v51 = vadd.f32 %v871_v46, %v609_v49  ;;  %v618_v52 = vadd.f32 %v871_v46, %v607_v50 }
 0x109   : > { %v610_v53 = vld [vmem:[#allocation2 + $0x18] sm:$0xff]  ;;  %v608_v54 = vld [vmem:[#allocation2 + $0x8] sm:$0xff] }
 0x10a   : > { %v648_v55 = vmul.f32 %v639_v47, %v620_v51  ;;  %v646_v56 = vmul.f32 %v629_v48, %v618_v52  ;;  %v621_v57 = vadd.f32 %v871_v46, %v610_v53  ;;  %v619_v58 = vadd.f32 %v871_v46, %v608_v54 }
 0x10c   : > { %vm652_vm1 = vcmp.ge.f32.partialorder %v648_v55, 0.0  ;;  %v656_v59 = vmul.f32 0.1, %v648_v55  ;;  %vm650_vm2 = vcmp.ge.f32.partialorder %v646_v56, 0.0  ;;  %v654_v60 = vmul.f32 0.1, %v646_v56 }
 0x10d   : > { %v649_v63 = vmul.f32 %v644_v61, %v621_v57  ;;  %v647_v0 = vmul.f32 %v634_v62, %v619_v58 }
 0x10e   : > { %v660_v1 = vsel %vm652_vm1, %v648_v55, %v656_v59  ;;  %v658_v2 = vsel %vm650_vm2, %v646_v56, %v654_v60 }
 0x10f   : > { %664 = vst.msk [vmem:[%s378_s14 + $0x10] sm:$0xff] %vm385_vm0, %v660_v1  ;;  %662 = vst.msk [vmem:[%s378_s14] sm:$0xff] %vm385_vm0, %v658_v2  ;;  %vm653_vm3 = vcmp.ge.f32.partialorder %v649_v63, 0.0  ;;  %v657_v3 = vmul.f32 0.1, %v649_v63  ;;  %vm651_vm4 = vcmp.ge.f32.partialorder %v647_v0, 0.0 }
 0x110   : > { %v655_v4 = vmul.f32 0.1, %v647_v0 }
 0x111   : > { %v661_v5 = vsel %vm653_vm3, %v649_v63, %v657_v3 }
 0x112   : > { %v659_v6 = vsel %vm651_vm4, %v647_v0, %v655_v4  ;;  %665 = vst.msk [vmem:[%s378_s14 + $0x18] sm:$0xff] %vm385_vm0, %v661_v5 }
 0x113   : > { %663 = vst.msk [vmem:[%s378_s14 + $0x8] sm:$0xff] %vm385_vm0, %v659_v6 }
 0x114 PF: > { %s14_s17 = sadd.s32 1, %s993_s17   ;;  %s1137_s15 = smov %s989_s16 }
 0x115   : > { %p11_p5 = scmp.ge.s32.totalorder %s14_s17, 4   ;;  %s1138_s16 = smov %s1140_s18 }
 0x117   :  { %13 = sbr.rel (!%p11_p5) target bundleno = 2 (0x2), region = 83 }

// kernel: forward.10
= control target key start
LH: loop header
LB: loop body
LE: loop exit
PB: predicated region body
PF: predicated region fallthrough
CT: control target
= control target key end

     0   :  { %s903_s15 = smov 0   ;;  %s905_s16 = smov 0   ;;  %s990_s0 = inlined_call_operand.vmem [shape: bf16[2,1,32,128], index: 0, kind: input, shape index: {}]   ;;  %s991_s1 = inlined_call_operand.vmem [shape: bf16[1,128,8], index: 1, kind: input, shape index: {}]   ;;  %s992_s2 = inlined_call_operand.vmem [shape: f32[1,1,8], index: 2, kind: input, shape index: {}]   ;;  %s993_s3 = inlined_call_operand.vmem [shape: f32[2,32,1], index: 3, kind: input, shape index: {}]   ;;  %s994_s4 = inlined_call_operand.vmem [shape: f32[2,1,32,8], index: 4, kind: output, shape index: {}]  }
   0x1   :  { %s907_s17 = smov 0  }
   0x2 LB: > { %s40_s18 = sadd.s32 1, %s870_s16  ;;  %p761_p0 = scmp.ge.s32.totalorder %s874_s17, 1  ;;  %s874_s17 = sphi %s907_s17, %s14_s17   ;;  %s870_s16 = sphi %s905_s16, %s996_s16   ;;  %s866_s15 = sphi %s903_s15, %s995_s15  }
   0x3   : > { %p42_p1 = scmp.ge.s32.totalorder %s40_s18, 2  ;;  %p252_p2 = scmp.lt.s32.totalorder %s874_s17, 3 }
   0x5   : > { %s998_s18 = smov (%p42_p1, %s40_s18), 0  ;;  %p253_p3 = pnand %p761_p0, %p252_p2 }
   0x6   : > { %v842_v0 = vld [vmem:[%s991_s1] sm:$0xff] (!%p253_p3)   ;;  %p319_p4 = scmp.lt.s32.totalorder (!%p253_p3), %s866_s15, 1  ;;  %v843_v1 = vld [vmem:[%s991_s1 + $0x8] sm:$0xff] (!%p253_p3)   ;;  %v876_v2 = vmov (!%p253_p3), 0   ;;  %v844_v3 = vld [vmem:[%s991_s1 + $0x10] sm:$0xff] (!%p253_p3)   ;;  %vm377_vm0 = vcmask (!%p253_p3), 64512  }
   0x7   : > { %256 = sbr.rel (%p253_p3) target bundleno = 272 (0x110), region = 36  ;;  %794 = vmatprep.subr.bf16.mxu0 (!%p253_p3), %v842_v0  ;;  %841 = vset.pattern.permute.xlu1 (!%p253_p3), %v876_v2  ;;  %v845_v4 = vld [vmem:[%s991_s1 + $0x18] sm:$0xff] (!%p253_p3)   ;;  %v877_v5 = vmov (!%p253_p3), 0.0   ;;  %v846_v9 = vld [vmem:[%s991_s1 + $0x20] sm:$0xff] (!%p253_p3)   ;;  %v847_v12 = vld [vmem:[%s991_s1 + $0x28] sm:$0xff] (!%p253_p3)  }
   0x8   : > { %795 = vmatpush3.bf16.msra.mxu0 (!%p253_p3), %v842_v0  ;;  %840 = vset.pattern.permute.xlu0 (!%p253_p3), %v876_v2  ;;  %380 = vst.msk [vmem:[#allocation2 + $0x10] sm:$0xff] (!%p253_p3), %vm377_vm0, %v877_v5  ;;  %378 = vst.msk [vmem:[#allocation2] sm:$0xff] (!%p253_p3), %vm377_vm0, %v877_v5  ;;  %v848_v13 = vld [vmem:[%s991_s1 + $0x30] sm:$0xff] (!%p253_p3)   ;;  %v849_v14 = vld [vmem:[%s991_s1 + $0x38] sm:$0xff] (!%p253_p3)  }
   0x9   : > { %796 = vmatprep.subr.bf16.mxu0 (!%p253_p3), %v843_v1  ;;  %379 = vst.msk [vmem:[#allocation2 + $0x8] sm:$0xff] (!%p253_p3), %vm377_vm0, %v877_v5  ;;  %381 = vst.msk [vmem:[#allocation2 + $0x18] sm:$0xff] (!%p253_p3), %vm377_vm0, %v877_v5  ;;  %v778_v28 = vld [vmem:[%s992_s2] ss:$0 sm:$0xff] (!%p253_p3) }
   0xc   : > { %797 = vmatpush3.bf16.msra.mxu0 (!%p253_p3), %v843_v1 }
   0xd   : > { %798 = vmatprep.subr.bf16.mxu0 (!%p253_p3), %v844_v3 }
   0xe   : > { %s1000_s15 = smov (!%p319_p4, %s866_s15), 1 }
   0xf   : > { %s781_s25 = sshll.u32 %s1000_s15, 4  ;;  %s782_s29 = sshll.u32 %s1000_s15, 5  ;;  %v384_v16 = vld [vmem:[#allocation2 + $0x10] sm:$0xff]  ;;  %v382_v17 = vld [vmem:[#allocation2] sm:$0xff] }
  0x10   : > { %s936_s28 = scalar_lea.vmem %s990_s0, %s781_s25  ;;  %s356_s8 = scalar_lea.vmem %s993_s3, %s782_s29  ;;  %799 = vmatpush3.bf16.msra.mxu0 %v844_v3  ;;  %v385_v19 = vld [vmem:[#allocation2 + $0x18] sm:$0xff]  ;;  %v383_v22 = vld [vmem:[#allocation2 + $0x8] sm:$0xff] }
  0x11   : > { %v850_v6 = vld [vmem:[%s936_s28] sm:$0xff]   ;;  %v544_v7 = vld [vmem:[%s356_s8 + $0x10] sm:$0xff]  ;;  %800 = vmatprep.subr.bf16.mxu0 %v845_v4  ;;  %v545_v10 = vld [vmem:[%s356_s8 + $0x18] sm:$0xff]  ;;  %s370_s25 = scalar_lea.vmem %s994_s4, %s782_s29 }
  0x12   : > { %810 = vmatprep.mubr.bf16.mxu0 %v850_v6  ;;  %v542_v8 = vld [vmem:[%s356_s8] sm:$0xff]  ;;  %558 = vperm.xlu1 %841, %v544_v7   ;;  %v543_v11 = vld [vmem:[%s356_s8 + $0x8] sm:$0xff] }
  0x13   : > { %548 = vperm.xlu0 %840, %v542_v8   ;;  %v851_v15 = vld [vmem:[%s936_s28 + $0x8] sm:$0xff]  }
  0x14   : > { %801 = vmatpush3.bf16.msra.mxu0 %v845_v4 }
  0x15   : > { %802 = vmatprep.subr.bf16.mxu0 %v846_v9 }
  0x16   : > { %563 = vperm.xlu1 %841, %v545_v10  }
  0x17   : > { %553 = vperm.xlu0 %840, %v543_v11  }
  0x18   : > { %803 = vmatpush3.bf16.msra.mxu0 %v846_v9 }
  0x19   : > { %804 = vmatprep.subr.bf16.mxu0 %v847_v12 }
  0x1c   : > { %805 = vmatpush3.bf16.msra.mxu0 %v847_v12 }
  0x1d   : > { %806 = vmatprep.subr.bf16.mxu0 %v848_v13 }
  0x20   : > { %807 = vmatpush3.bf16.msra.mxu0 %v848_v13 }
  0x21   : > { %808 = vmatprep.subr.bf16.mxu0 %v849_v14 }
  0x24   : > { %809 = vmatpush3.bf16.msra.mxu0 %v849_v14 }
  0x27   : > { %811 = vmatmul.mubr.bf16.vlgmr.msra.gmra.mrb[0].mxu0 %v851_v15 }
  0x91   : > { %v559_v29 = vpop.permute.xlu1 %558 }
  0x92   : > { %v549_v30 = vpop.permute.xlu0 %548 }
  0x95   : > { %v564_v40 = vpop.permute.xlu1 %563 }
  0x96   : > { %v554_v44 = vpop.permute.xlu0 %553 }
  0xfa   : > { %v812_v18 = vpop.f32.mrb[0].mxu0 }
  0xfb   : > { %v517_v20 = vadd.f32 %v812_v18, %v384_v16  ;;  %v500_v21 = vpop.f32.mrb[1].mxu0 }
  0xfc   : > { %v515_v23 = vadd.f32 %v500_v21, %v382_v17  ;;  %v813_v24 = vpop.f32.mrb[2].mxu0 }
  0xfd   : > { %522 = vst.msk [vmem:[#allocation2 + $0x10] sm:$0xff] %vm377_vm0, %v517_v20  ;;  %v518_v25 = vadd.f32 %v813_v24, %v385_v19  ;;  %v503_v26 = vpop.f32.mrb[3].mxu0 }
  0xfe   : > { %520 = vst.msk [vmem:[#allocation2] sm:$0xff] %vm377_vm0, %v515_v23  ;;  %v516_v27 = vadd.f32 %v503_v26, %v383_v22 }
  0xff   : > { %523 = vst.msk [vmem:[#allocation2 + $0x18] sm:$0xff] %vm377_vm0, %v518_v25 }
 0x100   : > { %521 = vst.msk [vmem:[#allocation2 + $0x8] sm:$0xff] %vm377_vm0, %v516_v27 }
 0x104   : > { %v529_v31 = vld [vmem:[#allocation2 + $0x10] sm:$0xff] }
 0x105   : > { %v540_v32 = vadd.f32 %v778_v28, %v529_v31  ;;  %v527_v33 = vld [vmem:[#allocation2] sm:$0xff] }
 0x106   : > { %v538_v34 = vadd.f32 %v778_v28, %v527_v33  ;;  %v530_v35 = vld [vmem:[#allocation2 + $0x18] sm:$0xff] }
 0x107   : > { %v568_v36 = vmul.f32 %v559_v29, %v540_v32  ;;  %v541_v37 = vadd.f32 %v778_v28, %v530_v35  ;;  %v528_v38 = vld [vmem:[#allocation2 + $0x8] sm:$0xff] }
 0x108   : > { %v566_v39 = vmul.f32 %v549_v30, %v538_v34  ;;  %v539_v41 = vadd.f32 %v778_v28, %v528_v38 }
 0x109   : > { %vm572_vm1 = vcmp.ge.f32.partialorder %v568_v36, 0.0  ;;  %v576_v42 = vmul.f32 0.1, %v568_v36  ;;  %v569_v43 = vmul.f32 %v564_v40, %v541_v37 }
 0x10a   : > { %vm570_vm2 = vcmp.ge.f32.partialorder %v566_v39, 0.0  ;;  %v574_v45 = vmul.f32 0.1, %v566_v39  ;;  %v567_v46 = vmul.f32 %v554_v44, %v539_v41 }
 0x10b   : > { %v580_v47 = vsel %vm572_vm1, %v568_v36, %v576_v42  ;;  %vm573_vm3 = vcmp.ge.f32.partialorder %v569_v43, 0.0  ;;  %v577_v48 = vmul.f32 0.1, %v569_v43 }
 0x10c   : > { %584 = vst.msk [vmem:[%s370_s25 + $0x10] sm:$0xff] %vm377_vm0, %v580_v47  ;;  %v578_v49 = vsel %vm570_vm2, %v566_v39, %v574_v45  ;;  %vm571_vm4 = vcmp.ge.f32.partialorder %v567_v46, 0.0  ;;  %v575_v50 = vmul.f32 0.1, %v567_v46 }
 0x10d   : > { %582 = vst.msk [vmem:[%s370_s25] sm:$0xff] %vm377_vm0, %v578_v49  ;;  %v581_v51 = vsel %vm573_vm3, %v569_v43, %v577_v48 }
 0x10e   : > { %585 = vst.msk [vmem:[%s370_s25 + $0x18] sm:$0xff] %vm377_vm0, %v581_v51  ;;  %v579_v52 = vsel %vm571_vm4, %v567_v46, %v575_v50 }
 0x10f   : > { %583 = vst.msk [vmem:[%s370_s25 + $0x8] sm:$0xff] %vm377_vm0, %v579_v52 }
 0x110 PF: > { %s14_s17 = sadd.s32 1, %s874_s17   ;;  %s995_s15 = smov %s870_s16 }
 0x111   : > { %p11_p5 = scmp.ge.s32.totalorder %s14_s17, 4   ;;  %s996_s16 = smov %s998_s18 }
 0x113   :  { %13 = sbr.rel (!%p11_p5) target bundleno = 2 (0x2), region = 83 }

// kernel: forward.11
= control target key start
LH: loop header
LB: loop body
LE: loop exit
PB: predicated region body
PF: predicated region fallthrough
CT: control target
= control target key end

     0   :  { %s872_s17 = smov 0   ;;  %s874_s18 = smov 0   ;;  %s948_s0 = inlined_call_operand.vmem [shape: bf16[2,1,32,128], index: 0, kind: input, shape index: {}]   ;;  %s949_s1 = inlined_call_operand.vmem [shape: bf16[1,128,1], index: 1, kind: input, shape index: {}]   ;;  %s950_s2 = inlined_call_operand.<no memory space> [shape: f32[1,1,1], index: 2, kind: input, shape index: {}]   ;;  %s951_s3 = inlined_call_operand.vmem [shape: f32[2,32,1], index: 3, kind: input, shape index: {}]   ;;  %s952_s4 = inlined_call_operand.vmem [shape: f32[2,1,32,1], index: 4, kind: output, shape index: {}]  }
   0x1   :  { %v9_v0 = vstv %s950_s2  ;;  %s876_s19 = smov 0  }
   0x2   :  { %10 = vst [vmem:[#allocation3] sm:$0x1] %v9_v0 }
   0x3 LB: > { %s42_s2 = sadd.s32 1, %s837_s18  ;;  %p731_p0 = scmp.ge.s32.totalorder %s841_s19, 1  ;;  %s841_s19 = sphi %s876_s19, %s16_s19   ;;  %s837_s18 = sphi %s874_s18, %s954_s18   ;;  %s833_s17 = sphi %s872_s17, %s953_s17  }
   0x4   : > { %p44_p1 = scmp.ge.s32.totalorder %s42_s2, 2  ;;  %p254_p2 = scmp.lt.s32.totalorder %s841_s19, 3 }
   0x6   : > { %s956_s2 = smov (%p44_p1, %s42_s2), 0  ;;  %p255_p3 = pnand %p731_p0, %p254_p2 }
   0x7   : > { %v809_v1 = vld [vmem:[%s949_s1] sm:$0xff] (!%p255_p3)   ;;  %p321_p4 = scmp.lt.s32.totalorder (!%p255_p3), %s833_s17, 1  ;;  %v810_v2 = vld [vmem:[%s949_s1 + $0x8] sm:$0xff] (!%p255_p3)   ;;  %vm379_vm0 = vcmask (!%p255_p3), 7168   ;;  %v811_v3 = vld [vmem:[%s949_s1 + $0x10] sm:$0xff] (!%p255_p3)   ;;  %v843_v4 = vmov (!%p255_p3), 0.0  }
   0x8   : > { %258 = sbr.rel (%p255_p3) target bundleno = 270 (0x10e), region = 36  ;;  %764 = vmatprep.subr.bf16.mxu0 (!%p255_p3), %v809_v1  ;;  %382 = vst.msk [vmem:[#allocation2 + $0x10] sm:$0xff] (!%p255_p3), %vm379_vm0, %v843_v4  ;;  %380 = vst.msk [vmem:[#allocation2] sm:$0xff] (!%p255_p3), %vm379_vm0, %v843_v4  ;;  %v812_v5 = vld [vmem:[%s949_s1 + $0x18] sm:$0xff] (!%p255_p3)   ;;  %v813_v7 = vld [vmem:[%s949_s1 + $0x20] sm:$0xff] (!%p255_p3)  }
   0x9   : > { %765 = vmatpush3.bf16.msra.mxu0 (!%p255_p3), %v809_v1  ;;  %381 = vst.msk [vmem:[#allocation2 + $0x8] sm:$0xff] (!%p255_p3), %vm379_vm0, %v843_v4  ;;  %383 = vst.msk [vmem:[#allocation2 + $0x18] sm:$0xff] (!%p255_p3), %vm379_vm0, %v843_v4  ;;  %v814_v8 = vld [vmem:[%s949_s1 + $0x28] sm:$0xff] (!%p255_p3)   ;;  %v815_v9 = vld [vmem:[%s949_s1 + $0x30] sm:$0xff] (!%p255_p3)  }
   0xa   : > { %766 = vmatprep.subr.bf16.mxu0 (!%p255_p3), %v810_v2  ;;  %v816_v10 = vld [vmem:[%s949_s1 + $0x38] sm:$0xff] (!%p255_p3)   ;;  %v748_v24 = vld [vmem:[#allocation3] ss:$0 sm:$0xff] (!%p255_p3) }
   0xd   : > { %767 = vmatpush3.bf16.msra.mxu0 (!%p255_p3), %v810_v2 }
   0xe   : > { %768 = vmatprep.subr.bf16.mxu0 (!%p255_p3), %v811_v3 }
   0xf   : > { %s958_s17 = smov (!%p321_p4, %s833_s17), 1  ;;  %v386_v12 = vld [vmem:[#allocation2 + $0x10] sm:$0xff]  ;;  %v384_v13 = vld [vmem:[#allocation2] sm:$0xff] }
  0x10   : > { %s751_s26 = sshll.u32 %s958_s17, 4  ;;  %v387_v15 = vld [vmem:[#allocation2 + $0x18] sm:$0xff]  ;;  %v385_v18 = vld [vmem:[#allocation2 + $0x8] sm:$0xff]  ;;  %s752_s14 = sshll.u32 %s958_s17, 5 }
  0x11   : > { %s335_s29 = scalar_lea.vmem %s948_s0, %s751_s26  ;;  %769 = vmatpush3.bf16.msra.mxu0 %v811_v3  ;;  %s358_s20 = scalar_lea.vmem %s951_s3, %s752_s14 }
  0x12   : > { %v817_v6 = vld [vmem:[%s335_s29] sm:$0xff]   ;;  %770 = vmatprep.subr.bf16.mxu0 %v812_v5  ;;  %v818_v11 = vld [vmem:[%s335_s29 + $0x8] sm:$0xff]   ;;  %v546_v25 = vld [vmem:[%s358_s20 + $0x10] sm:$0xff]  ;;  %s372_s17 = scalar_lea.vmem %s952_s4, %s752_s14 }
  0x13   : > { %780 = vmatprep.mubr.bf16.mxu0 %v817_v6  ;;  %v544_v27 = vld [vmem:[%s358_s20] sm:$0xff]  ;;  %v547_v30 = vld [vmem:[%s358_s20 + $0x18] sm:$0xff]  ;;  %v545_v33 = vld [vmem:[%s358_s20 + $0x8] sm:$0xff] }
  0x15   : > { %771 = vmatpush3.bf16.msra.mxu0 %v812_v5 }
  0x16   : > { %772 = vmatprep.subr.bf16.mxu0 %v813_v7 }
  0x19   : > { %773 = vmatpush3.bf16.msra.mxu0 %v813_v7 }
  0x1a   : > { %774 = vmatprep.subr.bf16.mxu0 %v814_v8 }
  0x1d   : > { %775 = vmatpush3.bf16.msra.mxu0 %v814_v8 }
  0x1e   : > { %776 = vmatprep.subr.bf16.mxu0 %v815_v9 }
  0x21   : > { %777 = vmatpush3.bf16.msra.mxu0 %v815_v9 }
  0x22   : > { %778 = vmatprep.subr.bf16.mxu0 %v816_v10 }
  0x25   : > { %779 = vmatpush3.bf16.msra.mxu0 %v816_v10 }
  0x28   : > { %781 = vmatmul.mubr.bf16.vlgmr.msra.gmra.mrb[0].mxu0 %v818_v11 }
  0xfb   : > { %v782_v14 = vpop.f32.mrb[0].mxu0 }
  0xfc   : > { %v519_v16 = vadd.f32 %v782_v14, %v386_v12  ;;  %v502_v17 = vpop.f32.mrb[1].mxu0 }
  0xfd   : > { %v517_v19 = vadd.f32 %v502_v17, %v384_v13  ;;  %v783_v20 = vpop.f32.mrb[2].mxu0 }
  0xfe   : > { %524 = vst.msk [vmem:[#allocation2 + $0x10] sm:$0xff] %vm379_vm0, %v519_v16  ;;  %v520_v21 = vadd.f32 %v783_v20, %v387_v15  ;;  %v505_v22 = vpop.f32.mrb[3].mxu0 }
  0xff   : > { %522 = vst.msk [vmem:[#allocation2] sm:$0xff] %vm379_vm0, %v517_v19  ;;  %v518_v23 = vadd.f32 %v505_v22, %v385_v18 }
 0x100   : > { %525 = vst.msk [vmem:[#allocation2 + $0x18] sm:$0xff] %vm379_vm0, %v520_v21 }
 0x101   : > { %523 = vst.msk [vmem:[#allocation2 + $0x8] sm:$0xff] %vm379_vm0, %v518_v23 }
 0x105   : > { %v531_v26 = vld [vmem:[#allocation2 + $0x10] sm:$0xff] }
 0x106   : > { %v542_v28 = vadd.f32 %v748_v24, %v531_v26  ;;  %v529_v29 = vld [vmem:[#allocation2] sm:$0xff] }
 0x107   : > { %v540_v31 = vadd.f32 %v748_v24, %v529_v29  ;;  %v532_v32 = vld [vmem:[#allocation2 + $0x18] sm:$0xff] }
 0x108   : > { %v550_v34 = vmul.f32 %v546_v25, %v542_v28  ;;  %v543_v35 = vadd.f32 %v748_v24, %v532_v32  ;;  %v530_v36 = vld [vmem:[#allocation2 + $0x8] sm:$0xff] }
 0x109   : > { %v548_v37 = vmul.f32 %v544_v27, %v540_v31  ;;  %v541_v38 = vadd.f32 %v748_v24, %v530_v36 }
 0x10a   : > { %554 = vst.msk [vmem:[%s372_s17 + $0x10] sm:$0xff] %vm379_vm0, %v550_v34  ;;  %v551_v39 = vmul.f32 %v547_v30, %v543_v35 }
 0x10b   : > { %552 = vst.msk [vmem:[%s372_s17] sm:$0xff] %vm379_vm0, %v548_v37  ;;  %v549_v40 = vmul.f32 %v545_v33, %v541_v38 }
 0x10c   : > { %555 = vst.msk [vmem:[%s372_s17 + $0x18] sm:$0xff] %vm379_vm0, %v551_v39 }
 0x10d   : > { %553 = vst.msk [vmem:[%s372_s17 + $0x8] sm:$0xff] %vm379_vm0, %v549_v40 }
 0x10e PF: > { %s16_s19 = sadd.s32 1, %s841_s19   ;;  %s953_s17 = smov %s837_s18 }
 0x10f   : > { %p13_p5 = scmp.ge.s32.totalorder %s16_s19, 4   ;;  %s954_s18 = smov %s956_s2 }
 0x111   :  { %15 = sbr.rel (!%p13_p5) target bundleno = 3 (0x3), region = 83 }

</bundles_post_ra>
